<compile_context>
chip_gen: v7x
topology: tpu7x:2x2x1
jax: 0.10.0
libtpu: 0.0.40
codegen_flags: <defaults>
</compile_context>

<pallas_src>
import functools

import jax
import jax.numpy as jnp
import numpy as np
from jax import lax
from jax.experimental import pallas as pl
from jax.experimental.pallas import tpu as pltpu

LN_EPS = 1e-5
BN_EPS = 1e-5


def _round_up(v, m):
    return (v + m - 1) // m * m


def _auto_time_tile(N, Dp, Ip, K):
    """Largest TT in {512,...,8} whose stage-1 VMEM footprint fits ~40 MiB."""
    budget = 40 * 1024 * 1024
    nmax = _round_up(N, 8)
    for tt in (512, 256, 128, 64, 32, 16, 8):
        if tt > nmax:
            continue
        win = tt + K - 1
        est = (2 * win * Dp * 4          # double-buffered halo windows (f32)
               + 2 * win * Ip * 4        # GLU scratch + value temp (f32)
               + win * 2 * Ip * 4        # fused 1x1 conv output temp (f32)
               + 2 * Dp * 2 * Ip * 2     # fused bf16 weight (default double-buffer)
               + 2 * tt * Ip * 2         # bf16 dw output block (double-buffered)
               + 2 * tt * Ip * 4)        # depthwise accumulator + slack
        if est <= budget:
            return tt
    return 8


# --------------------------------------------------------------------------------------
# Stage 1: LayerNorm -> fused 1x1 conv (value|gate) -> GLU -> depthwise conv -> BN partials
# --------------------------------------------------------------------------------------
def _stage1_kernel(x_hbm, ln_g_ref, ln_b_ref, w1_ref, b1_ref, wdw_ref, bdw_ref,
                   dw_ref, stats_ref, xbuf_ref, gbuf_ref, copy_sem,
                   *, true_dim, seq_len, pad_l, time_tile, ksize, inner_pad):
    b = pl.program_id(0)
    j = pl.program_id(1)
    n_t = pl.num_programs(1)
    TT, K, Ip = time_tile, ksize, inner_pad
    win = TT + K - 1

    def halo_copy(tile_idx, slot):
        start = pl.multiple_of(tile_idx * TT, 8)
        return pltpu.make_async_copy(
            x_hbm.at[b, pl.ds(start, win)], xbuf_ref.at[slot], copy_sem.at[slot])

    slot = j & 1

    # Prime the pipeline at the first tile of every batch (only exposed DMA per batch).
    @pl.when(j == 0)
    def _():
        halo_copy(0, 0).start()

    # Prefetch the next tile's halo window while computing this one.  Prefetch only
    # within the same batch so every started copy is waited on the same core
    # (batch is the only "parallel" grid axis -> safe under megacore sharding,
    # and no DMA is left in flight at the end of a batch).
    @pl.when(j + 1 < n_t)
    def _():
        halo_copy(j + 1, 1 - slot).start()

    halo_copy(j, slot).wait()
    xw = xbuf_ref[slot]                                     # (win, Dp) f32

    # ---- LayerNorm: centered two-pass variance; zero channel padding corrected exactly.
    Dp = xw.shape[-1]
    inv_d = 1.0 / true_dim
    mu = jnp.sum(xw, axis=-1, keepdims=True) * inv_d
    xc = xw - mu
    var = (jnp.sum(xc * xc, axis=-1, keepdims=True)
           - (Dp - true_dim) * mu * mu) * inv_d
    xn = xc * lax.rsqrt(jnp.maximum(var, 0.0) + LN_EPS)
    xn = xn * ln_g_ref[...] + ln_b_ref[...]

    # ---- fused pointwise Conv1d(dim, 2*inner, 1) on the MXU (bf16, f32 acc) + GLU.
    y = jnp.dot(xn.astype(jnp.bfloat16), w1_ref[...],
                preferred_element_type=jnp.float32) + b1_ref[...]   # (win, 2*Ip)
    g = y[:, :Ip] * jax.nn.sigmoid(y[:, Ip:])               # GLU, lane-aligned split

    # Zero halo rows outside the true sequence (== zero padding around the GLU output).
    prow = lax.broadcasted_iota(jnp.int32, (win, 1), 0) + j * TT
    g = jnp.where(jnp.logical_and(prow >= pad_l, prow < pad_l + seq_len), g, 0.0)

    # ---- depthwise Conv1d(inner, inner, K, groups=inner):
    # shifted-window loads from a VMEM scratch (plain loads, no per-tap relayouts).
    gbuf_ref[...] = g
    acc = jnp.zeros((TT, Ip), jnp.float32)
    for k in range(K):                                      # static trip count
        acc = acc + gbuf_ref[pl.ds(k, TT), :] * wdw_ref[pl.ds(k, 1), :]
    dw = acc + bdw_ref[...]                                 # (TT, Ip)
    # TODO(synk): on v6e/v7x the MAC above could run in packed bf16 (f32 acc); kept in
    # f32 so the same kernel is valid on v5e (no bf16 VPU).

    # Ragged last tile: zero rows past the true sequence length (masked out of BN stats,
    # sliced away from the final output).
    orow = lax.broadcasted_iota(jnp.int32, (TT, 1), 0) + j * TT
    ovalid = orow < seq_len
    dw = jnp.where(ovalid, dw, 0.0)

    dw_ref[0] = dw.astype(dw_ref.dtype)                     # bf16 store (halves HBM traffic)

    # ---- per-tile BatchNorm partials: sum + centered sum-of-squares (Chan combine).
    vc = jnp.minimum(seq_len - j * TT, TT).astype(jnp.float32)
    s = jnp.sum(dw, axis=0, keepdims=True)                  # (1, Ip)
    tmean = s / vc
    diff = jnp.where(ovalid, dw - tmean, 0.0)
    css = jnp.sum(diff * diff, axis=0, keepdims=True)       # (1, Ip)
    st = jnp.concatenate([s, css], axis=0)                  # (2, Ip)
    stats_ref[...] = st.reshape((1, 1) + st.shape)


# --------------------------------------------------------------------------------------
# Stage 2: folded BatchNorm -> Swish -> 1x1 conv back to dim
# --------------------------------------------------------------------------------------
def _stage2_kernel(dw_ref, scale_ref, shift_ref, w2_ref, b2_ref, o_ref):
    bn = dw_ref[0].astype(jnp.float32) * scale_ref[...] + shift_ref[...]
    sw = bn * jax.nn.sigmoid(bn)                            # Swish
    o_ref[0] = jnp.dot(sw.astype(jnp.bfloat16), w2_ref[...],
                       preferred_element_type=jnp.float32) + b2_ref[...]


# --------------------------------------------------------------------------------------
# Wrapper
# --------------------------------------------------------------------------------------
def conformer_conv_module(x, params, *, time_tile=None):
    """x: (B, N, D) float32 ('b n c'); params in PyTorch layout. mask=None path only."""
    B, N, D = x.shape
    w_dw = params["w_dw"]                                   # (inner, K)
    inner, K = w_dw.shape
    pad_l = K // 2
    pad_r = pad_l - (K + 1) % 2                             # total "same" padding = K - 1

    Dp = _round_up(D, 128)
    Ip = _round_up(inner, 128)

    if time_tile is None:
        time_tile = _auto_time_tile(N, Dp, Ip, K)
    TT = int(time_tile)
    assert TT % 8 == 0, "time_tile must be a multiple of 8"
    n_t = pl.cdiv(N, TT)                                    # ragged N handled by masking
    Np = n_t * TT
    win = TT + K - 1

    f32 = jnp.float32
    # Zero-pad: time halo (left pad_l, right up to the last tile's window) + lane-dense
    # channels (multiples of 128).
    # TODO(synk): the padded copy costs one extra HBM pass over x; clamping the halo DMA
    # in-kernel would avoid it but needs variable-length manual copies.
    x_p = jnp.pad(x.astype(f32),
                  ((0, 0), (pad_l, (Np + K - 1 - pad_l) - N), (0, Dp - D)))

    ln_g = jnp.pad(params["ln_g"].astype(f32), (0, Dp - D)).reshape(1, Dp)
    ln_b = jnp.pad(params["ln_b"].astype(f32), (0, Dp - D)).reshape(1, Dp)

    w1, b1 = params["w1"], params["b1"]                     # (2*inner, D), (2*inner,)
    w1v = jnp.pad(w1[:inner].T.astype(f32), ((0, Dp - D), (0, Ip - inner)))
    w1g = jnp.pad(w1[inner:].T.astype(f32), ((0, Dp - D), (0, Ip - inner)))
    w1f = jnp.concatenate([w1v, w1g], axis=1).astype(jnp.bfloat16)   # (Dp, 2*Ip) fused
    b1v = jnp.pad(b1[:inner].astype(f32), (0, Ip - inner))
    b1g = jnp.pad(b1[inner:].astype(f32), (0, Ip - inner))
    b1f = jnp.concatenate([b1v, b1g]).reshape(1, 2 * Ip)

    wdw = jnp.pad(w_dw.T.astype(f32), ((0, 0), (0, Ip - inner)))      # (K, Ip)
    bdw = jnp.pad(params["b_dw"].astype(f32), (0, Ip - inner)).reshape(1, Ip)

    w2 = jnp.pad(params["w2"].T.astype(f32),
                 ((0, Ip - inner), (0, Dp - D))).astype(jnp.bfloat16)  # (Ip, Dp)
    b2 = jnp.pad(params["b2"].astype(f32), (0, Dp - D)).reshape(1, Dp)

    k1 = functools.partial(_stage1_kernel, true_dim=D, seq_len=N, pad_l=pad_l,
                           time_tile=TT, ksize=K, inner_pad=Ip)
    # NOTE: weight BlockSpecs have constant index_maps (stay VMEM-resident).
    # pipeline_mode=pl.Buffered(1) would reclaim their second buffer; left at the
    # default for portability.
    dw, stats = pl.pallas_call(
        k1,
        out_shape=(jax.ShapeDtypeStruct((B, Np, Ip), jnp.bfloat16),
                   jax.ShapeDtypeStruct((B, n_t, 2, Ip), f32)),
        grid_spec=pltpu.PrefetchScalarGridSpec(
            num_scalar_prefetch=0,
            grid=(B, n_t),
            in_specs=[
                pl.BlockSpec(memory_space=pl.ANY),              # padded x stays in HBM
                pl.BlockSpec((1, Dp), lambda b, j: (0, 0)),     # ln_g (resident)
                pl.BlockSpec((1, Dp), lambda b, j: (0, 0)),     # ln_b
                pl.BlockSpec((Dp, 2 * Ip), lambda b, j: (0, 0)),  # fused w1 (bf16)
                pl.BlockSpec((1, 2 * Ip), lambda b, j: (0, 0)),   # fused b1
                pl.BlockSpec((K, Ip), lambda b, j: (0, 0)),     # depthwise weight
                pl.BlockSpec((1, Ip), lambda b, j: (0, 0)),     # depthwise bias
            ],
            out_specs=[
                pl.BlockSpec((1, TT, Ip), lambda b, j: (b, j, 0)),
                pl.BlockSpec((1, 1, 2, Ip), lambda b, j: (b, j, 0, 0)),
            ],
            scratch_shapes=[
                pltpu.VMEM((2, win, Dp), f32),                  # double-buffered halo
                pltpu.VMEM((win, Ip), f32),                     # GLU output scratch
                pltpu.SemaphoreType.DMA((2,)),
            ],
        ),
        compiler_params=pltpu.CompilerParams(
            # time axis is "arbitrary": the double-buffered halo DMA carries state
            # across consecutive time tiles; batch stays "parallel" for megacore.
            dimension_semantics=("parallel", "arbitrary"),
            vmem_limit_bytes=48 * 1024 * 1024,
        ),
    )(x_p, ln_g, ln_b, w1f, b1f, wdw, bdw)

    # Two-pass BatchNorm: combine per-tile (sum, centered sumsq) partials (Chan's method).
    counts = jnp.minimum(N - jnp.arange(n_t) * TT, TT).astype(f32)     # (n_t,)
    sums = stats[:, :, 0, :]                                           # (B, n_t, Ip)
    css = stats[:, :, 1, :]
    total = float(B * N)
    gmean = jnp.sum(sums, axis=(0, 1)) / total
    tmean = sums / counts[None, :, None]
    var = (jnp.sum(css, axis=(0, 1))
           + jnp.sum(counts[None, :, None] * (tmean - gmean) ** 2, axis=(0, 1))) / total
    var = jnp.maximum(var, 0.0)
    bn_g = jnp.pad(params["bn_g"].astype(f32), (0, Ip - inner))
    bn_b = jnp.pad(params["bn_b"].astype(f32), (0, Ip - inner))
    scale = (bn_g * lax.rsqrt(var + BN_EPS)).reshape(1, Ip)
    shift = (bn_b - gmean * scale[0]).reshape(1, Ip)

    out_p = pl.pallas_call(
        _stage2_kernel,
        out_shape=jax.ShapeDtypeStruct((B, Np, Dp), f32),
        grid_spec=pltpu.PrefetchScalarGridSpec(
            num_scalar_prefetch=0,
            grid=(B, n_t),
            in_specs=[
                pl.BlockSpec((1, TT, Ip), lambda b, j: (b, j, 0)),   # dw (bf16)
                pl.BlockSpec((1, Ip), lambda b, j: (0, 0)),          # BN scale
                pl.BlockSpec((1, Ip), lambda b, j: (0, 0)),          # BN shift
                pl.BlockSpec((Ip, Dp), lambda b, j: (0, 0)),         # w2 (bf16)
                pl.BlockSpec((1, Dp), lambda b, j: (0, 0)),          # b2
            ],
            out_specs=pl.BlockSpec((1, TT, Dp), lambda b, j: (b, j, 0)),
        ),
        compiler_params=pltpu.CompilerParams(
            dimension_semantics=("parallel", "parallel"),
            vmem_limit_bytes=32 * 1024 * 1024,
        ),
    )(dw, scale, shift, w2, b2)

    return out_p[:, :N, :D]
    # TODO(synk): optional `mask` argument (masked_fill path), Dropout p>0, and
    # BatchNorm running-stat updates are not implemented (mask=None, p=0, train stats).


# --------------------------------------------------------------------------------------
# Pure-JAX reference (f32) mirroring the PyTorch forward (mask=None, training-mode BN).
# --------------------------------------------------------------------------------------
def _reference(x, params):
    mu = x.mean(-1, keepdims=True)
    var = ((x - mu) ** 2).mean(-1, keepdims=True)
    xn = (x - mu) / jnp.sqrt(var + LN_EPS) * params["ln_g"] + params["ln_b"]
    y = xn @ params["w1"].T + params["b1"]
    inner = y.shape[-1] // 2
    g = y[..., :inner] * jax.nn.sigmoid(y[..., inner:])
    K = params["w_dw"].shape[-1]
    pad_l = K // 2
    pad_r = pad_l - (K + 1) % 2
    gp = jnp.pad(g, ((0, 0), (pad_l, pad_r), (0, 0)))
    N = x.shape[1]
    dw = sum(gp[:, k:k + N, :] * params["w_dw"][:, k] for k in range(K)) + params["b_dw"]
    mu_c = dw.mean((0, 1), keepdims=True)
    var_c = ((dw - mu_c) ** 2).mean((0, 1), keepdims=True)
    bn = (dw - mu_c) / jnp.sqrt(var_c + BN_EPS) * params["bn_g"] + params["bn_b"]
    sw = bn * jax.nn.sigmoid(bn)
    return sw @ params["w2"].T + params["b2"]


if __name__ == "__main__":
    key = jax.random.PRNGKey(0)
    B, N, D = 2, 40, 8                 # batch, seq (ragged vs. tile), dim
    expansion_factor = 2
    inner = D * expansion_factor       # 16
    K = 31                             # default kernel_size, non-causal "same" padding

    ks = jax.random.split(key, 10)
    x = jax.random.normal(ks[0], (B, N, D), jnp.float32)
    params = dict(
        ln_g=jnp.ones((D,), jnp.float32),
        ln_b=jnp.zeros((D,), jnp.float32),
        w1=0.2 * jax.random.normal(ks[1], (2 * inner, D), jnp.float32),
        b1=0.1 * jax.random.normal(ks[2], (2 * inner,), jnp.float32),
        w_dw=0.2 * jax.random.normal(ks[3], (inner, K), jnp.float32),
        b_dw=0.1 * jax.random.normal(ks[4], (inner,), jnp.float32),
        bn_g=jnp.ones((inner,), jnp.float32) + 0.1 * jax.random.normal(ks[5], (inner,), jnp.float32),
        bn_b=0.1 * jax.random.normal(ks[6], (inner,), jnp.float32),
        w2=0.2 * jax.random.normal(ks[7], (D, inner), jnp.float32),
        b2=0.1 * jax.random.normal(ks[8], (D,), jnp.float32),
    )

    # time_tile=16 with N=40 -> 3 time tiles (last one ragged): exercises the halo,
    # the double-buffered DMA, ragged-row masking and the two-pass BN combine.
    out = jax.block_until_ready(conformer_conv_module(x, params, time_tile=16))
    ref = jax.block_until_ready(_reference(x, params))
    # Tolerance covers the bf16 MXU matmuls and the bf16 storage of the dw intermediate.
    np.testing.assert_allclose(np.asarray(out), np.asarray(ref), rtol=2e-2, atol=2e-2)
    print("KERNEL_OK")
</pallas_src>

<mosaic_0001>
module attributes {stable_mosaic.version = 11 : i64} {
  func.func @_stage1_kernel(%arg0: i32, %arg1: i32, %arg2: memref<2x78x128xf32, #tpu.memory_space<any>>, %arg3: memref<1x128xf32, #tpu.memory_space<vmem>>, %arg4: memref<1x128xf32, #tpu.memory_space<vmem>>, %arg5: memref<128x256xbf16, #tpu.memory_space<vmem>>, %arg6: memref<1x256xf32, #tpu.memory_space<vmem>>, %arg7: memref<31x128xf32, #tpu.memory_space<vmem>>, %arg8: memref<1x128xf32, #tpu.memory_space<vmem>>, %arg9: memref<1x16x128xbf16, #tpu.memory_space<vmem>>, %arg10: memref<1x1x2x128xf32, #tpu.memory_space<vmem>>, %arg11: memref<2x46x128xf32, #tpu.memory_space<vmem>>, %arg12: memref<46x128xf32, #tpu.memory_space<vmem>>, %arg13: memref<2x!tpu.dma_semaphore, #tpu.memory_space<semaphore_mem>>) attributes {dimension_semantics = [#tpu.dimension_semantics<parallel>, #tpu.dimension_semantics<arbitrary>], iteration_bounds = array<i64: 2, 3>, scalar_prefetch = 0 : i64, scratch_operands = 3 : i64, tpu.core_type = #tpu.core_type<tc>, window_params = [{}, {pipeline_mode = #tpu.pipeline_mode<synchronous>, transform_indices = @transform_1, window_bounds = array<i64: 1, 128>}, {pipeline_mode = #tpu.pipeline_mode<synchronous>, transform_indices = @transform_2, window_bounds = array<i64: 1, 128>}, {pipeline_mode = #tpu.pipeline_mode<synchronous>, transform_indices = @transform_3, window_bounds = array<i64: 128, 256>}, {pipeline_mode = #tpu.pipeline_mode<synchronous>, transform_indices = @transform_4, window_bounds = array<i64: 1, 256>}, {pipeline_mode = #tpu.pipeline_mode<synchronous>, transform_indices = @transform_5, window_bounds = array<i64: 31, 128>}, {pipeline_mode = #tpu.pipeline_mode<synchronous>, transform_indices = @transform_6, window_bounds = array<i64: 1, 128>}, {transform_indices = @transform_7, window_bounds = array<i64: 1, 16, 128>}, {transform_indices = @transform_8, window_bounds = array<i64: 1, 1, 2, 128>}]} {
    %c1_i32 = arith.constant 1 : i32
    %0 = arith.andi %arg1, %c1_i32 : i32
    %c0_i32 = arith.constant 0 : i32
    %1 = arith.cmpi eq, %arg1, %c0_i32 : i32
    %2 = arith.extui %1 : i1 to i32
    %c0_i32_0 = arith.constant 0 : i32
    %3 = arith.cmpi ne, %2, %c0_i32_0 : i32
    scf.if %3 {
      %c0_i32_139 = arith.constant 0 : i32
      %268 = tpu.assume_multiple %c0_i32_139, 8 : i32
      %c0_i32_140 = arith.constant 0 : i32
      %c0_i32_141 = arith.constant 0 : i32
      %c0_i32_142 = arith.constant 0 : i32
      %269 = tpu.memref_slice %arg2[%arg0, %268, %c0_i32_142] : memref<2x78x128xf32, #tpu.memory_space<any>> -> memref<1x46x128xf32, #tpu.memory_space<any>>
      %270 = tpu.memref_squeeze %269 : memref<1x46x128xf32, #tpu.memory_space<any>> -> memref<46x128xf32, #tpu.memory_space<any>>
      %c0_i32_143 = arith.constant 0 : i32
      %c0_i32_144 = arith.constant 0 : i32
      %271 = tpu.memref_slice %arg11[%c0_i32_140, %c0_i32_143, %c0_i32_144] : memref<2x46x128xf32, #tpu.memory_space<vmem>> -> memref<1x46x128xf32, #tpu.memory_space<vmem>>
      %272 = tpu.memref_squeeze %271 : memref<1x46x128xf32, #tpu.memory_space<vmem>> -> memref<46x128xf32, #tpu.memory_space<vmem>>
      %273 = tpu.memref_slice %arg13[%c0_i32_141] : memref<2x!tpu.dma_semaphore, #tpu.memory_space<semaphore_mem>> -> memref<1x!tpu.dma_semaphore, #tpu.memory_space<semaphore_mem>>
      %274 = tpu.memref_squeeze %273 : memref<1x!tpu.dma_semaphore, #tpu.memory_space<semaphore_mem>> -> memref<!tpu.dma_semaphore, #tpu.memory_space<semaphore_mem>>
      tpu.enqueue_dma source(%270 : memref<46x128xf32, #tpu.memory_space<any>>) target(%272 : memref<46x128xf32, #tpu.memory_space<vmem>>) target_semaphore(%274 : memref<!tpu.dma_semaphore, #tpu.memory_space<semaphore_mem>>)
    } else {
    }
    %c1_i32_1 = arith.constant 1 : i32
    %4 = arith.addi %arg1, %c1_i32_1 : i32
    %c3_i32 = arith.constant 3 : i32
    %5 = arith.cmpi slt, %4, %c3_i32 : i32
    %6 = arith.extui %5 : i1 to i32
    %c0_i32_2 = arith.constant 0 : i32
    %7 = arith.cmpi ne, %6, %c0_i32_2 : i32
    scf.if %7 {
      %c1_i32_139 = arith.constant 1 : i32
      %268 = arith.addi %arg1, %c1_i32_139 : i32
      %c1_i32_140 = arith.constant 1 : i32
      %269 = arith.subi %c1_i32_140, %0 : i32
      %c16_i32_141 = arith.constant 16 : i32
      %270 = arith.muli %268, %c16_i32_141 : i32
      %271 = tpu.assume_multiple %270, 8 : i32
      %c0_i32_142 = arith.constant 0 : i32
      %272 = tpu.memref_slice %arg2[%arg0, %271, %c0_i32_142] : memref<2x78x128xf32, #tpu.memory_space<any>> -> memref<1x46x128xf32, #tpu.memory_space<any>>
      %273 = tpu.memref_squeeze %272 : memref<1x46x128xf32, #tpu.memory_space<any>> -> memref<46x128xf32, #tpu.memory_space<any>>
      %c0_i32_143 = arith.constant 0 : i32
      %c0_i32_144 = arith.constant 0 : i32
      %274 = tpu.memref_slice %arg11[%269, %c0_i32_143, %c0_i32_144] : memref<2x46x128xf32, #tpu.memory_space<vmem>> -> memref<1x46x128xf32, #tpu.memory_space<vmem>>
      %275 = tpu.memref_squeeze %274 : memref<1x46x128xf32, #tpu.memory_space<vmem>> -> memref<46x128xf32, #tpu.memory_space<vmem>>
      %276 = tpu.memref_slice %arg13[%269] : memref<2x!tpu.dma_semaphore, #tpu.memory_space<semaphore_mem>> -> memref<1x!tpu.dma_semaphore, #tpu.memory_space<semaphore_mem>>
      %277 = tpu.memref_squeeze %276 : memref<1x!tpu.dma_semaphore, #tpu.memory_space<semaphore_mem>> -> memref<!tpu.dma_semaphore, #tpu.memory_space<semaphore_mem>>
      tpu.enqueue_dma source(%273 : memref<46x128xf32, #tpu.memory_space<any>>) target(%275 : memref<46x128xf32, #tpu.memory_space<vmem>>) target_semaphore(%277 : memref<!tpu.dma_semaphore, #tpu.memory_space<semaphore_mem>>)
    } else {
    }
    %c16_i32 = arith.constant 16 : i32
    %8 = arith.muli %arg1, %c16_i32 : i32
    %9 = tpu.assume_multiple %8, 8 : i32
    %c0_i32_3 = arith.constant 0 : i32
    %10 = tpu.memref_slice %arg2[%arg0, %9, %c0_i32_3] : memref<2x78x128xf32, #tpu.memory_space<any>> -> memref<1x46x128xf32, #tpu.memory_space<any>>
    %11 = tpu.memref_squeeze %10 : memref<1x46x128xf32, #tpu.memory_space<any>> -> memref<46x128xf32, #tpu.memory_space<any>>
    %c0_i32_4 = arith.constant 0 : i32
    %c0_i32_5 = arith.constant 0 : i32
    %12 = tpu.memref_slice %arg11[%0, %c0_i32_4, %c0_i32_5] : memref<2x46x128xf32, #tpu.memory_space<vmem>> -> memref<1x46x128xf32, #tpu.memory_space<vmem>>
    %13 = tpu.memref_squeeze %12 : memref<1x46x128xf32, #tpu.memory_space<vmem>> -> memref<46x128xf32, #tpu.memory_space<vmem>>
    %14 = tpu.memref_slice %arg13[%0] : memref<2x!tpu.dma_semaphore, #tpu.memory_space<semaphore_mem>> -> memref<1x!tpu.dma_semaphore, #tpu.memory_space<semaphore_mem>>
    %15 = tpu.memref_squeeze %14 : memref<1x!tpu.dma_semaphore, #tpu.memory_space<semaphore_mem>> -> memref<!tpu.dma_semaphore, #tpu.memory_space<semaphore_mem>>
    tpu.wait_dma2 semaphore(%15 : memref<!tpu.dma_semaphore, #tpu.memory_space<semaphore_mem>>) src(%11 : memref<46x128xf32, #tpu.memory_space<any>>) dst(%13 : memref<46x128xf32, #tpu.memory_space<vmem>>)
    %16 = arith.index_cast %0 : i32 to index
    %c0 = arith.constant 0 : index
    %c0_6 = arith.constant 0 : index
    %17 = vector.load %arg11[%16, %c0, %c0_6] : memref<2x46x128xf32, #tpu.memory_space<vmem>>, vector<1x46x128xf32>
    %18 = vector.shape_cast %17 : vector<1x46x128xf32> to vector<46x128xf32>
    %cst = arith.constant dense<0.000000e+00> : vector<46xf32>
    %19 = vector.multi_reduction <add>, %18, %cst [1] : vector<46x128xf32> to vector<46xf32>
    %20 = vector.shape_cast %19 : vector<46xf32> to vector<46x1xf32>
    %cst_7 = arith.constant 1.250000e-01 : f32
    %21 = vector.broadcast %cst_7 : f32 to vector<46x1xf32>
    %22 = arith.mulf %20, %21 : vector<46x1xf32>
    %23 = vector.broadcast %22 : vector<46x1xf32> to vector<46x128xf32>
    %24 = arith.subf %18, %23 : vector<46x128xf32>
    %25 = arith.mulf %24, %24 : vector<46x128xf32>
    %cst_8 = arith.constant dense<0.000000e+00> : vector<46xf32>
    %26 = vector.multi_reduction <add>, %25, %cst_8 [1] : vector<46x128xf32> to vector<46xf32>
    %27 = vector.shape_cast %26 : vector<46xf32> to vector<46x1xf32>
    %cst_9 = arith.constant 1.200000e+02 : f32
    %28 = vector.broadcast %cst_9 : f32 to vector<46x1xf32>
    %29 = arith.mulf %28, %22 : vector<46x1xf32>
    %30 = arith.mulf %29, %22 : vector<46x1xf32>
    %31 = arith.subf %27, %30 : vector<46x1xf32>
    %cst_10 = arith.constant 1.250000e-01 : f32
    %32 = vector.broadcast %cst_10 : f32 to vector<46x1xf32>
    %33 = arith.mulf %31, %32 : vector<46x1xf32>
    %cst_11 = arith.constant 0.000000e+00 : f32
    %34 = vector.broadcast %cst_11 : f32 to vector<46x1xf32>
    %35 = arith.maximumf %33, %34 : vector<46x1xf32>
    %cst_12 = arith.constant 9.99999974E-6 : f32
    %36 = vector.broadcast %cst_12 : f32 to vector<46x1xf32>
    %37 = arith.addf %35, %36 : vector<46x1xf32>
    %38 = math.rsqrt %37 : vector<46x1xf32>
    %39 = vector.broadcast %38 : vector<46x1xf32> to vector<46x128xf32>
    %40 = arith.mulf %24, %39 : vector<46x128xf32>
    %c0_13 = arith.constant 0 : index
    %c0_14 = arith.constant 0 : index
    %41 = vector.load %arg3[%c0_13, %c0_14] : memref<1x128xf32, #tpu.memory_space<vmem>>, vector<1x128xf32>
    %42 = vector.broadcast %41 : vector<1x128xf32> to vector<46x128xf32>
    %43 = arith.mulf %40, %42 : vector<46x128xf32>
    %c0_15 = arith.constant 0 : index
    %c0_16 = arith.constant 0 : index
    %44 = vector.load %arg4[%c0_15, %c0_16] : memref<1x128xf32, #tpu.memory_space<vmem>>, vector<1x128xf32>
    %45 = vector.broadcast %44 : vector<1x128xf32> to vector<46x128xf32>
    %46 = arith.addf %43, %45 : vector<46x128xf32>
    %47 = arith.truncf %46 : vector<46x128xf32> to vector<46x128xbf16>
    %c0_17 = arith.constant 0 : index
    %c0_18 = arith.constant 0 : index
    %48 = vector.load %arg5[%c0_17, %c0_18] : memref<128x256xbf16, #tpu.memory_space<vmem>>, vector<128x256xbf16>
    %cst_19 = arith.constant dense<0.000000e+00> : vector<46x256xf32>
    %49 = tpu.matmul %47, %48, %cst_19 {dimension_numbers = #tpu.dot_dimension_numbers<[1], [0], [0], [1], [0, 0, 1, 1], [], []>} : vector<46x128xbf16>, vector<128x256xbf16>, vector<46x256xf32> -> vector<46x256xf32>
    %c0_20 = arith.constant 0 : index
    %c0_21 = arith.constant 0 : index
    %50 = vector.load %arg6[%c0_20, %c0_21] : memref<1x256xf32, #tpu.memory_space<vmem>>, vector<1x256xf32>
    %51 = vector.broadcast %50 : vector<1x256xf32> to vector<46x256xf32>
    %52 = arith.addf %49, %51 : vector<46x256xf32>
    %53 = vector.extract_strided_slice %52 {offsets = [0, 0], sizes = [46, 128], strides = [1, 1]} : vector<46x256xf32> to vector<46x128xf32>
    %54 = vector.extract_strided_slice %52 {offsets = [0, 128], sizes = [46, 128], strides = [1, 1]} : vector<46x256xf32> to vector<46x128xf32>
    %55 = arith.negf %54 : vector<46x128xf32>
    %56 = math.exp %55 : vector<46x128xf32>
    %cst_22 = arith.constant 1.000000e+00 : f32
    %57 = vector.broadcast %cst_22 : f32 to vector<46x128xf32>
    %58 = arith.addf %57, %56 : vector<46x128xf32>
    %59 = arith.divf %57, %58 : vector<46x128xf32>
    %60 = arith.mulf %53, %59 : vector<46x128xf32>
    %61 = tpu.iota {dimensions = array<i32: 0>} : vector<46x1xi32>
    %c16_i32_23 = arith.constant 16 : i32
    %62 = arith.muli %arg1, %c16_i32_23 : i32
    %63 = vector.broadcast %62 : i32 to vector<46x1xi32>
    %64 = arith.addi %61, %63 : vector<46x1xi32>
    %c15_i32 = arith.constant 15 : i32
    %65 = vector.broadcast %c15_i32 : i32 to vector<46x1xi32>
    %66 = arith.cmpi sge, %64, %65 : vector<46x1xi32>
    %c55_i32 = arith.constant 55 : i32
    %67 = vector.broadcast %c55_i32 : i32 to vector<46x1xi32>
    %68 = arith.cmpi slt, %64, %67 : vector<46x1xi32>
    %69 = arith.andi %66, %68 : vector<46x1xi1>
    %cst_24 = arith.constant 0.000000e+00 : f32
    %70 = vector.shape_cast %69 : vector<46x1xi1> to vector<46x1xi1>
    %71 = vector.broadcast %70 : vector<46x1xi1> to vector<46x128xi1>
    %72 = vector.broadcast %cst_24 : f32 to vector<46x128xf32>
    %73 = arith.select %71, %60, %72 : vector<46x128xi1>, vector<46x128xf32>
    %c0_25 = arith.constant 0 : index
    %c0_26 = arith.constant 0 : index
    %74 = vector.load %arg12[%c0_25, %c0_26] : memref<46x128xf32, #tpu.memory_space<vmem>>, vector<46x128xf32>
    tpu.vector_store %arg12[%c0_25, %c0_26], %73 {strides = array<i32>} : memref<46x128xf32, #tpu.memory_space<vmem>>, vector<46x128xf32>,
    %cst_27 = arith.constant 0.000000e+00 : f32
    %75 = vector.broadcast %cst_27 : f32 to vector<16x128xf32>
    %c0_28 = arith.constant 0 : index
    %c0_29 = arith.constant 0 : index
    %76 = vector.load %arg12[%c0_28, %c0_29] : memref<46x128xf32, #tpu.memory_space<vmem>>, vector<16x128xf32>
    %c0_30 = arith.constant 0 : index
    %c0_31 = arith.constant 0 : index
    %77 = vector.load %arg7[%c0_30, %c0_31] : memref<31x128xf32, #tpu.memory_space<vmem>>, vector<1x128xf32>
    %78 = vector.broadcast %77 : vector<1x128xf32> to vector<16x128xf32>
    %79 = arith.mulf %76, %78 : vector<16x128xf32>
    %80 = arith.addf %75, %79 : vector<16x128xf32>
    %c1 = arith.constant 1 : index
    %c0_32 = arith.constant 0 : index
    %81 = vector.load %arg12[%c1, %c0_32] : memref<46x128xf32, #tpu.memory_space<vmem>>, vector<16x128xf32>
    %c1_33 = arith.constant 1 : index
    %c0_34 = arith.constant 0 : index
    %82 = vector.load %arg7[%c1_33, %c0_34] : memref<31x128xf32, #tpu.memory_space<vmem>>, vector<1x128xf32>
    %83 = vector.broadcast %82 : vector<1x128xf32> to vector<16x128xf32>
    %84 = arith.mulf %81, %83 : vector<16x128xf32>
    %85 = arith.addf %80, %84 : vector<16x128xf32>
    %c2 = arith.constant 2 : index
    %c0_35 = arith.constant 0 : index
    %86 = vector.load %arg12[%c2, %c0_35] : memref<46x128xf32, #tpu.memory_space<vmem>>, vector<16x128xf32>
    %c2_36 = arith.constant 2 : index
    %c0_37 = arith.constant 0 : index
    %87 = vector.load %arg7[%c2_36, %c0_37] : memref<31x128xf32, #tpu.memory_space<vmem>>, vector<1x128xf32>
    %88 = vector.broadcast %87 : vector<1x128xf32> to vector<16x128xf32>
    %89 = arith.mulf %86, %88 : vector<16x128xf32>
    %90 = arith.addf %85, %89 : vector<16x128xf32>
    %c3 = arith.constant 3 : index
    %c0_38 = arith.constant 0 : index
    %91 = vector.load %arg12[%c3, %c0_38] : memref<46x128xf32, #tpu.memory_space<vmem>>, vector<16x128xf32>
    %c3_39 = arith.constant 3 : index
    %c0_40 = arith.constant 0 : index
    %92 = vector.load %arg7[%c3_39, %c0_40] : memref<31x128xf32, #tpu.memory_space<vmem>>, vector<1x128xf32>
    %93 = vector.broadcast %92 : vector<1x128xf32> to vector<16x128xf32>
    %94 = arith.mulf %91, %93 : vector<16x128xf32>
    %95 = arith.addf %90, %94 : vector<16x128xf32>
    %c4 = arith.constant 4 : index
    %c0_41 = arith.constant 0 : index
    %96 = vector.load %arg12[%c4, %c0_41] : memref<46x128xf32, #tpu.memory_space<vmem>>, vector<16x128xf32>
    %c4_42 = arith.constant 4 : index
    %c0_43 = arith.constant 0 : index
    %97 = vector.load %arg7[%c4_42, %c0_43] : memref<31x128xf32, #tpu.memory_space<vmem>>, vector<1x128xf32>
    %98 = vector.broadcast %97 : vector<1x128xf32> to vector<16x128xf32>
    %99 = arith.mulf %96, %98 : vector<16x128xf32>
    %100 = arith.addf %95, %99 : vector<16x128xf32>
    %c5 = arith.constant 5 : index
    %c0_44 = arith.constant 0 : index
    %101 = vector.load %arg12[%c5, %c0_44] : memref<46x128xf32, #tpu.memory_space<vmem>>, vector<16x128xf32>
    %c5_45 = arith.constant 5 : index
    %c0_46 = arith.constant 0 : index
    %102 = vector.load %arg7[%c5_45, %c0_46] : memref<31x128xf32, #tpu.memory_space<vmem>>, vector<1x128xf32>
    %103 = vector.broadcast %102 : vector<1x128xf32> to vector<16x128xf32>
    %104 = arith.mulf %101, %103 : vector<16x128xf32>
    %105 = arith.addf %100, %104 : vector<16x128xf32>
    %c6 = arith.constant 6 : index
    %c0_47 = arith.constant 0 : index
    %106 = vector.load %arg12[%c6, %c0_47] : memref<46x128xf32, #tpu.memory_space<vmem>>, vector<16x128xf32>
    %c6_48 = arith.constant 6 : index
    %c0_49 = arith.constant 0 : index
    %107 = vector.load %arg7[%c6_48, %c0_49] : memref<31x128xf32, #tpu.memory_space<vmem>>, vector<1x128xf32>
    %108 = vector.broadcast %107 : vector<1x128xf32> to vector<16x128xf32>
    %109 = arith.mulf %106, %108 : vector<16x128xf32>
    %110 = arith.addf %105, %109 : vector<16x128xf32>
    %c7 = arith.constant 7 : index
    %c0_50 = arith.constant 0 : index
    %111 = vector.load %arg12[%c7, %c0_50] : memref<46x128xf32, #tpu.memory_space<vmem>>, vector<16x128xf32>
    %c7_51 = arith.constant 7 : index
    %c0_52 = arith.constant 0 : index
    %112 = vector.load %arg7[%c7_51, %c0_52] : memref<31x128xf32, #tpu.memory_space<vmem>>, vector<1x128xf32>
    %113 = vector.broadcast %112 : vector<1x128xf32> to vector<16x128xf32>
    %114 = arith.mulf %111, %113 : vector<16x128xf32>
    %115 = arith.addf %110, %114 : vector<16x128xf32>
    %c8 = arith.constant 8 : index
    %c0_53 = arith.constant 0 : index
    %116 = vector.load %arg12[%c8, %c0_53] : memref<46x128xf32, #tpu.memory_space<vmem>>, vector<16x128xf32>
    %c8_54 = arith.constant 8 : index
    %c0_55 = arith.constant 0 : index
    %117 = vector.load %arg7[%c8_54, %c0_55] : memref<31x128xf32, #tpu.memory_space<vmem>>, vector<1x128xf32>
    %118 = vector.broadcast %117 : vector<1x128xf32> to vector<16x128xf32>
    %119 = arith.mulf %116, %118 : vector<16x128xf32>
    %120 = arith.addf %115, %119 : vector<16x128xf32>
    %c9 = arith.constant 9 : index
    %c0_56 = arith.constant 0 : index
    %121 = vector.load %arg12[%c9, %c0_56] : memref<46x128xf32, #tpu.memory_space<vmem>>, vector<16x128xf32>
    %c9_57 = arith.constant 9 : index
    %c0_58 = arith.constant 0 : index
    %122 = vector.load %arg7[%c9_57, %c0_58] : memref<31x128xf32, #tpu.memory_space<vmem>>, vector<1x128xf32>
    %123 = vector.broadcast %122 : vector<1x128xf32> to vector<16x128xf32>
    %124 = arith.mulf %121, %123 : vector<16x128xf32>
    %125 = arith.addf %120, %124 : vector<16x128xf32>
    %c10 = arith.constant 10 : index
    %c0_59 = arith.constant 0 : index
    %126 = vector.load %arg12[%c10, %c0_59] : memref<46x128xf32, #tpu.memory_space<vmem>>, vector<16x128xf32>
    %c10_60 = arith.constant 10 : index
    %c0_61 = arith.constant 0 : index
    %127 = vector.load %arg7[%c10_60, %c0_61] : memref<31x128xf32, #tpu.memory_space<vmem>>, vector<1x128xf32>
    %128 = vector.broadcast %127 : vector<1x128xf32> to vector<16x128xf32>
    %129 = arith.mulf %126, %128 : vector<16x128xf32>
    %130 = arith.addf %125, %129 : vector<16x128xf32>
    %c11 = arith.constant 11 : index
    %c0_62 = arith.constant 0 : index
    %131 = vector.load %arg12[%c11, %c0_62] : memref<46x128xf32, #tpu.memory_space<vmem>>, vector<16x128xf32>
    %c11_63 = arith.constant 11 : index
    %c0_64 = arith.constant 0 : index
    %132 = vector.load %arg7[%c11_63, %c0_64] : memref<31x128xf32, #tpu.memory_space<vmem>>, vector<1x128xf32>
    %133 = vector.broadcast %132 : vector<1x128xf32> to vector<16x128xf32>
    %134 = arith.mulf %131, %133 : vector<16x128xf32>
    %135 = arith.addf %130, %134 : vector<16x128xf32>
    %c12 = arith.constant 12 : index
    %c0_65 = arith.constant 0 : index
    %136 = vector.load %arg12[%c12, %c0_65] : memref<46x128xf32, #tpu.memory_space<vmem>>, vector<16x128xf32>
    %c12_66 = arith.constant 12 : index
    %c0_67 = arith.constant 0 : index
    %137 = vector.load %arg7[%c12_66, %c0_67] : memref<31x128xf32, #tpu.memory_space<vmem>>, vector<1x128xf32>
    %138 = vector.broadcast %137 : vector<1x128xf32> to vector<16x128xf32>
    %139 = arith.mulf %136, %138 : vector<16x128xf32>
    %140 = arith.addf %135, %139 : vector<16x128xf32>
    %c13 = arith.constant 13 : index
    %c0_68 = arith.constant 0 : index
    %141 = vector.load %arg12[%c13, %c0_68] : memref<46x128xf32, #tpu.memory_space<vmem>>, vector<16x128xf32>
    %c13_69 = arith.constant 13 : index
    %c0_70 = arith.constant 0 : index
    %142 = vector.load %arg7[%c13_69, %c0_70] : memref<31x128xf32, #tpu.memory_space<vmem>>, vector<1x128xf32>
    %143 = vector.broadcast %142 : vector<1x128xf32> to vector<16x128xf32>
    %144 = arith.mulf %141, %143 : vector<16x128xf32>
    %145 = arith.addf %140, %144 : vector<16x128xf32>
    %c14 = arith.constant 14 : index
    %c0_71 = arith.constant 0 : index
    %146 = vector.load %arg12[%c14, %c0_71] : memref<46x128xf32, #tpu.memory_space<vmem>>, vector<16x128xf32>
    %c14_72 = arith.constant 14 : index
    %c0_73 = arith.constant 0 : index
    %147 = vector.load %arg7[%c14_72, %c0_73] : memref<31x128xf32, #tpu.memory_space<vmem>>, vector<1x128xf32>
    %148 = vector.broadcast %147 : vector<1x128xf32> to vector<16x128xf32>
    %149 = arith.mulf %146, %148 : vector<16x128xf32>
    %150 = arith.addf %145, %149 : vector<16x128xf32>
    %c15 = arith.constant 15 : index
    %c0_74 = arith.constant 0 : index
    %151 = vector.load %arg12[%c15, %c0_74] : memref<46x128xf32, #tpu.memory_space<vmem>>, vector<16x128xf32>
    %c15_75 = arith.constant 15 : index
    %c0_76 = arith.constant 0 : index
    %152 = vector.load %arg7[%c15_75, %c0_76] : memref<31x128xf32, #tpu.memory_space<vmem>>, vector<1x128xf32>
    %153 = vector.broadcast %152 : vector<1x128xf32> to vector<16x128xf32>
    %154 = arith.mulf %151, %153 : vector<16x128xf32>
    %155 = arith.addf %150, %154 : vector<16x128xf32>
    %c16 = arith.constant 16 : index
    %c0_77 = arith.constant 0 : index
    %156 = vector.load %arg12[%c16, %c0_77] : memref<46x128xf32, #tpu.memory_space<vmem>>, vector<16x128xf32>
    %c16_78 = arith.constant 16 : index
    %c0_79 = arith.constant 0 : index
    %157 = vector.load %arg7[%c16_78, %c0_79] : memref<31x128xf32, #tpu.memory_space<vmem>>, vector<1x128xf32>
    %158 = vector.broadcast %157 : vector<1x128xf32> to vector<16x128xf32>
    %159 = arith.mulf %156, %158 : vector<16x128xf32>
    %160 = arith.addf %155, %159 : vector<16x128xf32>
    %c17 = arith.constant 17 : index
    %c0_80 = arith.constant 0 : index
    %161 = vector.load %arg12[%c17, %c0_80] : memref<46x128xf32, #tpu.memory_space<vmem>>, vector<16x128xf32>
    %c17_81 = arith.constant 17 : index
    %c0_82 = arith.constant 0 : index
    %162 = vector.load %arg7[%c17_81, %c0_82] : memref<31x128xf32, #tpu.memory_space<vmem>>, vector<1x128xf32>
    %163 = vector.broadcast %162 : vector<1x128xf32> to vector<16x128xf32>
    %164 = arith.mulf %161, %163 : vector<16x128xf32>
    %165 = arith.addf %160, %164 : vector<16x128xf32>
    %c18 = arith.constant 18 : index
    %c0_83 = arith.constant 0 : index
    %166 = vector.load %arg12[%c18, %c0_83] : memref<46x128xf32, #tpu.memory_space<vmem>>, vector<16x128xf32>
    %c18_84 = arith.constant 18 : index
    %c0_85 = arith.constant 0 : index
    %167 = vector.load %arg7[%c18_84, %c0_85] : memref<31x128xf32, #tpu.memory_space<vmem>>, vector<1x128xf32>
    %168 = vector.broadcast %167 : vector<1x128xf32> to vector<16x128xf32>
    %169 = arith.mulf %166, %168 : vector<16x128xf32>
    %170 = arith.addf %165, %169 : vector<16x128xf32>
    %c19 = arith.constant 19 : index
    %c0_86 = arith.constant 0 : index
    %171 = vector.load %arg12[%c19, %c0_86] : memref<46x128xf32, #tpu.memory_space<vmem>>, vector<16x128xf32>
    %c19_87 = arith.constant 19 : index
    %c0_88 = arith.constant 0 : index
    %172 = vector.load %arg7[%c19_87, %c0_88] : memref<31x128xf32, #tpu.memory_space<vmem>>, vector<1x128xf32>
    %173 = vector.broadcast %172 : vector<1x128xf32> to vector<16x128xf32>
    %174 = arith.mulf %171, %173 : vector<16x128xf32>
    %175 = arith.addf %170, %174 : vector<16x128xf32>
    %c20 = arith.constant 20 : index
    %c0_89 = arith.constant 0 : index
    %176 = vector.load %arg12[%c20, %c0_89] : memref<46x128xf32, #tpu.memory_space<vmem>>, vector<16x128xf32>
    %c20_90 = arith.constant 20 : index
    %c0_91 = arith.constant 0 : index
    %177 = vector.load %arg7[%c20_90, %c0_91] : memref<31x128xf32, #tpu.memory_space<vmem>>, vector<1x128xf32>
    %178 = vector.broadcast %177 : vector<1x128xf32> to vector<16x128xf32>
    %179 = arith.mulf %176, %178 : vector<16x128xf32>
    %180 = arith.addf %175, %179 : vector<16x128xf32>
    %c21 = arith.constant 21 : index
    %c0_92 = arith.constant 0 : index
    %181 = vector.load %arg12[%c21, %c0_92] : memref<46x128xf32, #tpu.memory_space<vmem>>, vector<16x128xf32>
    %c21_93 = arith.constant 21 : index
    %c0_94 = arith.constant 0 : index
    %182 = vector.load %arg7[%c21_93, %c0_94] : memref<31x128xf32, #tpu.memory_space<vmem>>, vector<1x128xf32>
    %183 = vector.broadcast %182 : vector<1x128xf32> to vector<16x128xf32>
    %184 = arith.mulf %181, %183 : vector<16x128xf32>
    %185 = arith.addf %180, %184 : vector<16x128xf32>
    %c22 = arith.constant 22 : index
    %c0_95 = arith.constant 0 : index
    %186 = vector.load %arg12[%c22, %c0_95] : memref<46x128xf32, #tpu.memory_space<vmem>>, vector<16x128xf32>
    %c22_96 = arith.constant 22 : index
    %c0_97 = arith.constant 0 : index
    %187 = vector.load %arg7[%c22_96, %c0_97] : memref<31x128xf32, #tpu.memory_space<vmem>>, vector<1x128xf32>
    %188 = vector.broadcast %187 : vector<1x128xf32> to vector<16x128xf32>
    %189 = arith.mulf %186, %188 : vector<16x128xf32>
    %190 = arith.addf %185, %189 : vector<16x128xf32>
    %c23 = arith.constant 23 : index
    %c0_98 = arith.constant 0 : index
    %191 = vector.load %arg12[%c23, %c0_98] : memref<46x128xf32, #tpu.memory_space<vmem>>, vector<16x128xf32>
    %c23_99 = arith.constant 23 : index
    %c0_100 = arith.constant 0 : index
    %192 = vector.load %arg7[%c23_99, %c0_100] : memref<31x128xf32, #tpu.memory_space<vmem>>, vector<1x128xf32>
    %193 = vector.broadcast %192 : vector<1x128xf32> to vector<16x128xf32>
    %194 = arith.mulf %191, %193 : vector<16x128xf32>
    %195 = arith.addf %190, %194 : vector<16x128xf32>
    %c24 = arith.constant 24 : index
    %c0_101 = arith.constant 0 : index
    %196 = vector.load %arg12[%c24, %c0_101] : memref<46x128xf32, #tpu.memory_space<vmem>>, vector<16x128xf32>
    %c24_102 = arith.constant 24 : index
    %c0_103 = arith.constant 0 : index
    %197 = vector.load %arg7[%c24_102, %c0_103] : memref<31x128xf32, #tpu.memory_space<vmem>>, vector<1x128xf32>
    %198 = vector.broadcast %197 : vector<1x128xf32> to vector<16x128xf32>
    %199 = arith.mulf %196, %198 : vector<16x128xf32>
    %200 = arith.addf %195, %199 : vector<16x128xf32>
    %c25 = arith.constant 25 : index
    %c0_104 = arith.constant 0 : index
    %201 = vector.load %arg12[%c25, %c0_104] : memref<46x128xf32, #tpu.memory_space<vmem>>, vector<16x128xf32>
    %c25_105 = arith.constant 25 : index
    %c0_106 = arith.constant 0 : index
    %202 = vector.load %arg7[%c25_105, %c0_106] : memref<31x128xf32, #tpu.memory_space<vmem>>, vector<1x128xf32>
    %203 = vector.broadcast %202 : vector<1x128xf32> to vector<16x128xf32>
    %204 = arith.mulf %201, %203 : vector<16x128xf32>
    %205 = arith.addf %200, %204 : vector<16x128xf32>
    %c26 = arith.constant 26 : index
    %c0_107 = arith.constant 0 : index
    %206 = vector.load %arg12[%c26, %c0_107] : memref<46x128xf32, #tpu.memory_space<vmem>>, vector<16x128xf32>
    %c26_108 = arith.constant 26 : index
    %c0_109 = arith.constant 0 : index
    %207 = vector.load %arg7[%c26_108, %c0_109] : memref<31x128xf32, #tpu.memory_space<vmem>>, vector<1x128xf32>
    %208 = vector.broadcast %207 : vector<1x128xf32> to vector<16x128xf32>
    %209 = arith.mulf %206, %208 : vector<16x128xf32>
    %210 = arith.addf %205, %209 : vector<16x128xf32>
    %c27 = arith.constant 27 : index
    %c0_110 = arith.constant 0 : index
    %211 = vector.load %arg12[%c27, %c0_110] : memref<46x128xf32, #tpu.memory_space<vmem>>, vector<16x128xf32>
    %c27_111 = arith.constant 27 : index
    %c0_112 = arith.constant 0 : index
    %212 = vector.load %arg7[%c27_111, %c0_112] : memref<31x128xf32, #tpu.memory_space<vmem>>, vector<1x128xf32>
    %213 = vector.broadcast %212 : vector<1x128xf32> to vector<16x128xf32>
    %214 = arith.mulf %211, %213 : vector<16x128xf32>
    %215 = arith.addf %210, %214 : vector<16x128xf32>
    %c28 = arith.constant 28 : index
    %c0_113 = arith.constant 0 : index
    %216 = vector.load %arg12[%c28, %c0_113] : memref<46x128xf32, #tpu.memory_space<vmem>>, vector<16x128xf32>
    %c28_114 = arith.constant 28 : index
    %c0_115 = arith.constant 0 : index
    %217 = vector.load %arg7[%c28_114, %c0_115] : memref<31x128xf32, #tpu.memory_space<vmem>>, vector<1x128xf32>
    %218 = vector.broadcast %217 : vector<1x128xf32> to vector<16x128xf32>
    %219 = arith.mulf %216, %218 : vector<16x128xf32>
    %220 = arith.addf %215, %219 : vector<16x128xf32>
    %c29 = arith.constant 29 : index
    %c0_116 = arith.constant 0 : index
    %221 = vector.load %arg12[%c29, %c0_116] : memref<46x128xf32, #tpu.memory_space<vmem>>, vector<16x128xf32>
    %c29_117 = arith.constant 29 : index
    %c0_118 = arith.constant 0 : index
    %222 = vector.load %arg7[%c29_117, %c0_118] : memref<31x128xf32, #tpu.memory_space<vmem>>, vector<1x128xf32>
    %223 = vector.broadcast %222 : vector<1x128xf32> to vector<16x128xf32>
    %224 = arith.mulf %221, %223 : vector<16x128xf32>
    %225 = arith.addf %220, %224 : vector<16x128xf32>
    %c30 = arith.constant 30 : index
    %c0_119 = arith.constant 0 : index
    %226 = vector.load %arg12[%c30, %c0_119] : memref<46x128xf32, #tpu.memory_space<vmem>>, vector<16x128xf32>
    %c30_120 = arith.constant 30 : index
    %c0_121 = arith.constant 0 : index
    %227 = vector.load %arg7[%c30_120, %c0_121] : memref<31x128xf32, #tpu.memory_space<vmem>>, vector<1x128xf32>
    %228 = vector.broadcast %227 : vector<1x128xf32> to vector<16x128xf32>
    %229 = arith.mulf %226, %228 : vector<16x128xf32>
    %230 = arith.addf %225, %229 : vector<16x128xf32>
    %c0_122 = arith.constant 0 : index
    %c0_123 = arith.constant 0 : index
    %231 = vector.load %arg8[%c0_122, %c0_123] : memref<1x128xf32, #tpu.memory_space<vmem>>, vector<1x128xf32>
    %232 = vector.broadcast %231 : vector<1x128xf32> to vector<16x128xf32>
    %233 = arith.addf %230, %232 : vector<16x128xf32>
    %234 = tpu.iota {dimensions = array<i32: 0>} : vector<16x1xi32>
    %c16_i32_124 = arith.constant 16 : i32
    %235 = arith.muli %arg1, %c16_i32_124 : i32
    %236 = vector.broadcast %235 : i32 to vector<16x1xi32>
    %237 = arith.addi %234, %236 : vector<16x1xi32>
    %c40_i32 = arith.constant 40 : i32
    %238 = vector.broadcast %c40_i32 : i32 to vector<16x1xi32>
    %239 = arith.cmpi slt, %237, %238 : vector<16x1xi32>
    %cst_125 = arith.constant 0.000000e+00 : f32
    %240 = vector.shape_cast %239 : vector<16x1xi1> to vector<16x1xi1>
    %241 = vector.broadcast %240 : vector<16x1xi1> to vector<16x128xi1>
    %242 = vector.broadcast %cst_125 : f32 to vector<16x128xf32>
    %243 = arith.select %241, %233, %242 : vector<16x128xi1>, vector<16x128xf32>
    %244 = arith.truncf %243 : vector<16x128xf32> to vector<16x128xbf16>
    %c0_126 = arith.constant 0 : index
    %c0_127 = arith.constant 0 : index
    %c0_128 = arith.constant 0 : index
    %245 = vector.load %arg9[%c0_126, %c0_127, %c0_128] : memref<1x16x128xbf16, #tpu.memory_space<vmem>>, vector<1x16x128xbf16>
    %246 = vector.shape_cast %245 : vector<1x16x128xbf16> to vector<16x128xbf16>
    %247 = vector.shape_cast %244 : vector<16x128xbf16> to vector<1x16x128xbf16>
    tpu.vector_store %arg9[%c0_126, %c0_127, %c0_128], %247 {strides = array<i32>} : memref<1x16x128xbf16, #tpu.memory_space<vmem>>, vector<1x16x128xbf16>,
    %c16_i32_129 = arith.constant 16 : i32
    %248 = arith.muli %arg1, %c16_i32_129 : i32
    %c40_i32_130 = arith.constant 40 : i32
    %249 = arith.subi %c40_i32_130, %248 : i32
    %c16_i32_131 = arith.constant 16 : i32
    %250 = arith.minsi %249, %c16_i32_131 : i32
    %251 = arith.sitofp %250 : i32 to f32
    %cst_132 = arith.constant dense<0.000000e+00> : vector<128xf32>
    %252 = vector.multi_reduction <add>, %243, %cst_132 [0] : vector<16x128xf32> to vector<128xf32>
    %253 = vector.shape_cast %252 : vector<128xf32> to vector<1x128xf32>
    %254 = vector.broadcast %251 : f32 to vector<1x128xf32>
    %255 = arith.divf %253, %254 : vector<1x128xf32>
    %256 = vector.broadcast %255 : vector<1x128xf32> to vector<16x128xf32>
    %257 = arith.subf %243, %256 : vector<16x128xf32>
    %cst_133 = arith.constant 0.000000e+00 : f32
    %258 = vector.shape_cast %239 : vector<16x1xi1> to vector<16x1xi1>
    %259 = vector.broadcast %258 : vector<16x1xi1> to vector<16x128xi1>
    %260 = vector.broadcast %cst_133 : f32 to vector<16x128xf32>
    %261 = arith.select %259, %257, %260 : vector<16x128xi1>, vector<16x128xf32>
    %262 = arith.mulf %261, %261 : vector<16x128xf32>
    %cst_134 = arith.constant dense<0.000000e+00> : vector<128xf32>
    %263 = vector.multi_reduction <add>, %262, %cst_134 [0] : vector<16x128xf32> to vector<128xf32>
    %264 = vector.shape_cast %263 : vector<128xf32> to vector<1x128xf32>
    %265 = tpu.concatenate %253, %264 in 0 : vector<1x128xf32>, vector<1x128xf32> -> vector<2x128xf32>
    %266 = vector.shape_cast %265 : vector<2x128xf32> to vector<1x1x2x128xf32>
    %c0_135 = arith.constant 0 : index
    %c0_136 = arith.constant 0 : index
    %c0_137 = arith.constant 0 : index
    %c0_138 = arith.constant 0 : index
    %267 = vector.load %arg10[%c0_135, %c0_136, %c0_137, %c0_138] : memref<1x1x2x128xf32, #tpu.memory_space<vmem>>, vector<1x1x2x128xf32>
    tpu.vector_store %arg10[%c0_135, %c0_136, %c0_137, %c0_138], %266 {strides = array<i32>} : memref<1x1x2x128xf32, #tpu.memory_space<vmem>>, vector<1x1x2x128xf32>,
    return
  }
  func.func @transform_1(%arg0: i32, %arg1: i32) -> (i32, i32) {
    %c0_i32 = arith.constant 0 : i32
    %c0_i32_0 = arith.constant 0 : i32
    %c0_i32_1 = arith.constant 0 : i32
    return %c0_i32, %c0_i32_0 : i32, i32
  }
  func.func @transform_2(%arg0: i32, %arg1: i32) -> (i32, i32) {
    %c0_i32 = arith.constant 0 : i32
    %c0_i32_0 = arith.constant 0 : i32
    %c0_i32_1 = arith.constant 0 : i32
    return %c0_i32, %c0_i32_0 : i32, i32
  }
  func.func @transform_3(%arg0: i32, %arg1: i32) -> (i32, i32) {
    %c0_i32 = arith.constant 0 : i32
    %c0_i32_0 = arith.constant 0 : i32
    %c0_i32_1 = arith.constant 0 : i32
    return %c0_i32, %c0_i32_0 : i32, i32
  }
  func.func @transform_4(%arg0: i32, %arg1: i32) -> (i32, i32) {
    %c0_i32 = arith.constant 0 : i32
    %c0_i32_0 = arith.constant 0 : i32
    %c0_i32_1 = arith.constant 0 : i32
    return %c0_i32, %c0_i32_0 : i32, i32
  }
  func.func @transform_5(%arg0: i32, %arg1: i32) -> (i32, i32) {
    %c0_i32 = arith.constant 0 : i32
    %c0_i32_0 = arith.constant 0 : i32
    %c0_i32_1 = arith.constant 0 : i32
    return %c0_i32, %c0_i32_0 : i32, i32
  }
  func.func @transform_6(%arg0: i32, %arg1: i32) -> (i32, i32) {
    %c0_i32 = arith.constant 0 : i32
    %c0_i32_0 = arith.constant 0 : i32
    %c0_i32_1 = arith.constant 0 : i32
    return %c0_i32, %c0_i32_0 : i32, i32
  }
  func.func @transform_7(%arg0: i32, %arg1: i32) -> (i32, i32, i32) {
    %c0_i32 = arith.constant 0 : i32
    %c0_i32_0 = arith.constant 0 : i32
    return %arg0, %arg1, %c0_i32 : i32, i32, i32
  }
  func.func @transform_8(%arg0: i32, %arg1: i32) -> (i32, i32, i32, i32) {
    %c0_i32 = arith.constant 0 : i32
    %c0_i32_0 = arith.constant 0 : i32
    %c0_i32_1 = arith.constant 0 : i32
    return %arg0, %arg1, %c0_i32, %c0_i32_0 : i32, i32, i32, i32
  }
}

</mosaic_0001>

<bundles_post_ra>
// kernel: tpu_custom_call.1
= control target key start
LH: loop header
LB: loop body
LE: loop exit
PB: predicated region body
PF: predicated region fallthrough
CT: control target
= control target key end

     0   :  { %14 = vsyncpa [#allocation6], 0  ;;  %s2318_s0 = inlined_call_operand.vmem [shape: f32[2,78,128], index: 0, kind: input, shape index: {}]   ;;  %s2319_s1 = inlined_call_operand.vmem [shape: f32[1,128], index: 1, kind: input, shape index: {}]   ;;  %s2320_s2 = inlined_call_operand.vmem [shape: f32[1,128], index: 2, kind: input, shape index: {}]   ;;  %s2321_s3 = inlined_call_operand.vmem [shape: bf16[128,256], index: 3, kind: input, shape index: {}]   ;;  %s2322_s4 = inlined_call_operand.vmem [shape: f32[1,256], index: 4, kind: input, shape index: {}]   ;;  %s2323_s5 = inlined_call_operand.vmem [shape: f32[31,128], index: 5, kind: input, shape index: {}]   ;;  %s2324_s6 = inlined_call_operand.vmem [shape: f32[1,128], index: 6, kind: input, shape index: {}]   ;;  %s2325_s7 = inlined_call_operand.hbm [shape: bf16[2,48,128], index: 7, kind: output, shape index: {0}]   ;;  %s2326_s8 = inlined_call_operand.hbm [shape: f32[2,3,2,128], index: 8, kind: output, shape index: {1}]  }
   0x1   :  { %16 = vsyncpa [#allocation6 + $0x1], 0 }
   0x2   :  { %17 = vsyncpa [#allocation8], 0 }
   0x3   :  { %19 = vsyncpa [#allocation8 + $0x1], 0  ;;  %s1834_s27 = smov 0   ;;  %s1836_s28 = smov 0  }
   0x4   :  { %s1838_s29 = smov 0   ;;  %s1840_s30 = smov 0  }
   0x5   :  { %s1842_s9 = smov 0   ;;  %s1844_s10 = smov 0  }
   0x6   :  { %s1846_s11 = smov 0   ;;  %s1848_s12 = smov 0  }
   0x7 LB: > { %2331 = sst [smem:[#allocation14_spill]] %s1774_s10  ;;  %s1401_s13 = sadd.s32 4294967295, %s1782_s12   ;;  %s1782_s12 = sphi %s1848_s12, %s25_s12   ;;  %s1778_s11 = sphi %s1846_s11, %s2344_s11   ;;  %s1774_s10 = sphi %s1844_s10, %s2343_s10   ;;  %s1770_s9 = sphi %s1842_s9, %s2342_s9   ;;  %s1766_s30 = sphi %s1840_s30, %s2341_s30   ;;  %s1762_s29 = sphi %s1838_s29, %s2347_s29   ;;  %s1758_s28 = sphi %s1836_s28, %s2346_s28   ;;  %s1754_s27 = sphi %s1834_s27, %s2345_s27  }
   0x8   : > { %2332 = sst [smem:[#allocation15_spill]] %s1778_s11  ;;  %s1402_s14 = sadd.s32 4294967294, %s1782_s12  }
   0x9   : > { %s34_s15 = sadd.s32 1, %s1774_s10  ;;  %s37_s16 = sadd.s32 1, %s1778_s11 }
   0xa   : > { %p35_p0 = scmp.ge.s32.totalorder %s34_s15, 3  ;;  %p182_p1 = scmp.ne.s32.totalorder %s1762_s29, %s1758_s28 }
   0xb   : > { %p183_p2 = scmp.eq.s32.totalorder %s1401_s13, 5  ;;  %p188_p5 = scmp.ne.s32.totalorder %s1758_s28, %s1754_s27 }
   0xc   : > { %s2349_s15 = smov (%p35_p0, %s34_s15), 0  ;;  %s2351_s16 = smov (!%p35_p0, %s37_s16), %s1778_s11 }
   0xd   : > { %2333 = sst [smem:[#allocation16_spill]] %s2349_s15  ;;  %s168_s17 = ssub.s32 %s1774_s10, %s2349_s15 }
   0xe   : > { %p1885_p3 = por %p183_p2, %p182_p1  ;;  %p39_p4 = scmp.ge.s32.totalorder %s2351_s16, 2 }
   0xf   : > { %p189_p6 = scmp.eq.s32.totalorder %s1402_s14, 5  ;;  %p1404_p7 = scmp.ge.s32.totalorder %s1782_s12, 1 }
  0x10   : > { %s2353_s16 = smov (%p39_p4, %s2351_s16), 0  ;;  %p253_p9 = scmp.lt.s32.totalorder %s1782_s12, 7 }
  0x11   : > { %2335 = sst [smem:[#allocation17_spill]] %s2353_s16  ;;  %p1894_p8 = por %p189_p6, %p188_p5 }
  0x12   : > { %s167_s20 = ssub.s32 %s1778_s11, %s2353_s16  ;;  %s172_s21 = sadd.s32 1, %s1762_s29 }
  0x13   : > { %s169_s22 = sor.u32 %s168_s17, %s167_s20  ;;  %p254_p10 = pnand %p1404_p7, %p253_p9 }
  0x14   : > { %p170_p11 = scmp.eq.s32.totalorder %s169_s22, 0  ;;  %s1906_s24 = sand.u32 (!%p254_p10), 1, %s1758_s28  }
  0x15   : > { %257 = sbr.rel (%p254_p10) target bundleno = 761 (0x2f9), region = 44  ;;  %s1909_s25 = sand.u32 (!%p254_p10), 1, %s1766_s30 }
  0x16   : > { %s1903_s23 = scalar_select %p170_p11, %s1762_s29, %s172_s21  }
  0x17   : > { %s1405_s26 = sshll.u32 (!%p254_p10), %s1906_s24, 3  ;;  %s1406_s13 = sshll.u32 (!%p254_p10), %s1906_s24, 1 }
  0x18   : > { %2337 = sst [smem:[#allocation18_spill]] %s1903_s23  ;;  %s1913_s14 = scalar_lea.vmem (!%p254_p10), [#allocation5], %s1405_s26 }
  0x19   : > { %s1915_s16 = scalar_lea.vmem (!%p254_p10), [#allocation7], %s1406_s13  ;;  %p1407_p12 = scmp.ne.s32.totalorder (!%p254_p10), %s1766_s30, 0 }
  0x1c   : > { %291 = sbr.rel (%p1407_p12) target bundleno = 37 (0x25), region = 48 }
  0x1d   : > { %s292_s17 = smul.u32 (!%p1407_p12), 80, %s1770_s9 }
  0x1f   : > { %s294_s22 = scalar_lea.vmem (!%p1407_p12), %s2318_s0, %s292_s17 }
  0x20   : > { %v332_v0 = vld [vmem:[%s294_s22] sm:$0xff] (!%p1407_p12)  ;;  %v334_v1 = vld [vmem:[%s294_s22 + $0x8] sm:$0xff] (!%p1407_p12)  ;;  %v336_v2 = vld [vmem:[%s294_s22 + $0x10] sm:$0xff] (!%p1407_p12) }
  0x21   : > { %333 = vst [vmem:[#allocation2] sm:$0xff] (!%p1407_p12), %v332_v0  ;;  %335 = vst [vmem:[#allocation2 + $0x8] sm:$0xff] (!%p1407_p12), %v334_v1  ;;  %v338_v3 = vld [vmem:[%s294_s22 + $0x18] sm:$0xff] (!%p1407_p12)  ;;  %v340_v4 = vld [vmem:[%s294_s22 + $0x20] sm:$0xff] (!%p1407_p12) }
  0x22   : > { %337 = vst [vmem:[#allocation2 + $0x10] sm:$0xff] (!%p1407_p12), %v336_v2  ;;  %v1408_v5 = vld [vmem:[%s294_s22 + $0x28] sm:$0x3f] (!%p1407_p12)  ;;  %339 = vst [vmem:[#allocation2 + $0x18] sm:$0xff] (!%p1407_p12), %v338_v3 }
  0x23   : > { %341 = vst [vmem:[#allocation2 + $0x20] sm:$0xff] %v340_v4  ;;  %352 = vst [vmem:[#allocation2 + $0x28] sm:$0x3f] %v1408_v5 }
  0x24   : > { %356 = vsyncadd [#allocation4], 736 }
  0x25 PF: > { %s357_s26 = sadd.s32 1, %s1766_s30 }
  0x26   : > { %p1409_p13 = scmp.ge.s32.totalorder %s357_s26, 3 }
  0x27   : > { %s362_s13 = ssub.s32 (!%p1409_p13), 1, %s1909_s25  ;;  %s1410_s17 = sshll.u32 (!%p1409_p13), %s1766_s30, 4 }
  0x28   : > { %361 = sbr.rel (%p1409_p13) target bundleno = 50 (0x32), region = 89  ;;  %s369_s26 = scalar_lea.sflag (!%p1409_p13), [#allocation4], %s362_s13 }
  0x29   : > { %s1308_s20 = smul.u32 (!%p1409_p13), 80, %s1770_s9 }
  0x2a   : > { %s367_s21 = smul.u32 (!%p1409_p13), 48, %s362_s13 }
  0x2b   : > { %s1309_s15 = sadd.s32 (!%p1409_p13), %s1410_s17, %s1308_s20 }
  0x2c   : > { %s1310_s22 = scalar_lea.vmem (!%p1409_p13), %s2318_s0, %s1309_s15  ;;  %s368_s23 = scalar_lea.vmem (!%p1409_p13), [#allocation2], %s367_s21 }
  0x2d   : > { %v1412_v6 = vld [vmem:[%s1310_s22 + $0x10] sm:$0xff] (!%p1409_p13)  ;;  %v1413_v7 = vld [vmem:[%s1310_s22 + $0x18] sm:$0xff] (!%p1409_p13)  ;;  %v1414_v8 = vld [vmem:[%s1310_s22 + $0x20] sm:$0xff] (!%p1409_p13) }
  0x2e   : > { %408 = vst [vmem:[%s368_s23] sm:$0xff] (!%p1409_p13), %v1412_v6  ;;  %410 = vst [vmem:[%s368_s23 + $0x8] sm:$0xff] (!%p1409_p13), %v1413_v7  ;;  %v1415_v9 = vld [vmem:[%s1310_s22 + $0x28] sm:$0xff] (!%p1409_p13)  ;;  %v1416_v10 = vld [vmem:[%s1310_s22 + $0x30] sm:$0xff] (!%p1409_p13) }
  0x2f   : > { %412 = vst [vmem:[%s368_s23 + $0x10] sm:$0xff] %v1414_v8  ;;  %v1417_v11 = vld [vmem:[%s1310_s22 + $0x38] sm:$0x3f]  ;;  %414 = vst [vmem:[%s368_s23 + $0x18] sm:$0xff] %v1415_v9 }
  0x30   : > { %416 = vst [vmem:[%s368_s23 + $0x20] sm:$0xff] %v1416_v10  ;;  %1418 = vst [vmem:[%s368_s23 + $0x28] sm:$0x3f] %v1417_v11 }
  0x31   : > { %431 = vsyncadd %s369_s26, 736 }
  0x32 PF: > { %s1420_s10 = sshll.u32 %s1766_s30, 4  ;;  %s433_s11 = smul.u32 48, %s1909_s25 }
  0x33   : > { %s435_s17 = scalar_lea.sflag [#allocation4], %s1909_s25 }
  0x34   : > { %s434_s15 = scalar_lea.vmem [#allocation2], %s433_s11 }
  0x35   : > { %1742 = dma.done.wait %s435_s17, 736 }
  0x36   : > { %1743 = vsyncadd %s435_s17, 4294966560  ;;  %vm455_vm0 = vcmask 1045504   ;;  %v1592_v19 = vld [vmem:[%s2321_s3 + $0x4] ss:$8 sps:$4 sm:$0xff]   ;;  %v1594_v45 = vld [vmem:[%s2321_s3] ss:$8 sps:$4 sm:$0xff]  }
  0x37   : > { %675 = vmatprep.subr.bf16.mxu0 %v1592_v19  ;;  %1495 = vmatprep.subr.bf16.mxu1 %v1592_v19  ;;  %v1595_v46 = vld [vmem:[%s2321_s3 + $0x14] ss:$8 sps:$4 sm:$0xff]   ;;  %v1597_v47 = vld [vmem:[%s2321_s3 + $0x10] ss:$8 sps:$4 sm:$0xff]   ;;  %v1598_v48 = vld [vmem:[%s2321_s3 + $0x24] ss:$8 sps:$4 sm:$0xff]  }
  0x38   : > { %676 = vmatpush1.bf16.msra.mxu0 %v1594_v45  ;;  %1503 = vmatpush1.bf16.msra.mxu1 %v1594_v45  ;;  %v1600_v49 = vld [vmem:[%s2321_s3 + $0x20] ss:$8 sps:$4 sm:$0xff]   ;;  %v1601_v50 = vld [vmem:[%s2321_s3 + $0x34] ss:$8 sps:$4 sm:$0xff]   ;;  %v1603_v51 = vld [vmem:[%s2321_s3 + $0x30] ss:$8 sps:$4 sm:$0xff]  }
  0x39   : > { %v441_v12 = vld [vmem:[%s434_s15 + $0x10] sm:$0xff]  ;;  %v439_v13 = vld [vmem:[%s434_s15] sm:$0xff]  ;;  %v442_v14 = vld [vmem:[%s434_s15 + $0x18] sm:$0xff]  ;;  %677 = vmatprep.subr.bf16.mxu0 %v1595_v46  ;;  %1496 = vmatprep.subr.bf16.mxu1 %v1595_v46  ;;  %v1784_v59 = vmov 0   ;;  %s1182_s21 = ssub.s32 40, %s1420_s10  ;;  %s1511_s23 = smul.u32 6, %s1770_s9 }
  0x3a   : > { %449 = vadd.xlane.f32.xlu1 %v441_v12  ;;  %445 = vadd.xlane.f32.xlu0 %v439_v13  ;;  %v440_v15 = vld [vmem:[%s434_s15 + $0x8] sm:$0xff]  ;;  %v443_v17 = vld [vmem:[%s434_s15 + $0x20] sm:$0xff]  ;;  %p1183_p0 = scmp.lt.s32.totalorder %s1182_s21, 16  ;;  %s1481_s13 = sshll.u32 %s1766_s30, 1 }
  0x3b   : > { %v444_v16 = vld [vmem:[%s434_s15 + $0x28] sm:$0x3f]  ;;  %707 = vmatprep.mubr.bf16.mxu0 %v1784_v59  ;;  %717 = vmatprep.mubr.bf16.mxu1 %v1784_v59  ;;  %s1230_s22 = sadd.s32 %s1511_s23, %s1481_s13  ;;  %s1233_s11 = sshll.u32 %s1913_s14, 4  ;;  %s2221_s11 = int_to_ptr.vmem [resolvable:$true] %s1233_s11 }
  0x3c   : > { %v456_v18 = vsel %vm455_vm0, %v444_v16, 0.0  ;;  %678 = vmatpush1.bf16.msra.mxu0 %v1597_v47  ;;  %1504 = vmatpush1.bf16.msra.mxu1 %v1597_v47  ;;  %v1604_v52 = vld [vmem:[%s2321_s3 + $0x44] ss:$8 sps:$4 sm:$0xff]   ;;  %v1606_v53 = vld [vmem:[%s2321_s3 + $0x40] ss:$8 sps:$4 sm:$0xff]   ;;  %s2355_s21 = smov (!%p1183_p0, %s1182_s21), 16 }
  0x3d   : > { %679 = vmatprep.subr.bf16.mxu0 %v1598_v48  ;;  %1497 = vmatprep.subr.bf16.mxu1 %v1598_v48  ;;  %v1607_v54 = vld [vmem:[%s2321_s3 + $0x54] ss:$8 sps:$4 sm:$0xff]   ;;  %v1609_v55 = vld [vmem:[%s2321_s3 + $0x50] ss:$8 sps:$4 sm:$0xff]   ;;  %v1610_v56 = vld [vmem:[%s2321_s3 + $0x64] ss:$8 sps:$4 sm:$0xff]   ;;  %s1185_s26 = scvt.s32.f32 %s2355_s21 }
  0x3e   : > { %451 = vadd.xlane.f32.xlu1 %v442_v14  ;;  %447 = vadd.xlane.f32.xlu0 %v440_v15  ;;  %v1612_v57 = vld [vmem:[%s2321_s3 + $0x60] ss:$8 sps:$4 sm:$0xff]   ;;  %v1613_v58 = vld [vmem:[%s2321_s3 + $0x74] ss:$8 sps:$4 sm:$0xff]   ;;  %v1615_v60 = vld [vmem:[%s2321_s3 + $0x70] ss:$8 sps:$4 sm:$0xff]  }
  0x3f   : > { %s1482_s15 = sshll.u32 %s1230_s22, 6  ;;  %s1213_s23 = scalar_lea.sflag [#allocation6], %s1906_s24 }
  0x40   : > { %680 = vmatpush1.bf16.msra.mxu0 %v1600_v49  ;;  %1505 = vmatpush1.bf16.msra.mxu1 %v1600_v49  ;;  %s2226_s17 = scalar_lea.hbm %s2325_s7, %s1482_s15  ;;  %s1654_s13 = scalar_lea.vmem %s2221_s11, 128 }
  0x41   : > { %681 = vmatprep.subr.bf16.mxu0 %v1601_v50  ;;  %1498 = vmatprep.subr.bf16.mxu1 %v1601_v50  ;;  %p1655_p1 = scmp.ne.s32.totalorder %s2221_s11, %s1654_s13  ;;  %s1785_s25 = smov [#allocation5]  }
  0x42   : > { %453 = vadd.xlane.f32.xlu1 %v443_v17  ;;  %457 = vadd.xlane.f32.xlu0 %v456_v18  ;;  %s1658_s20 = sshll.u32 %s1785_s25, 4  ;;  %s1659_s20 = int_to_ptr.vmem [resolvable:$false] %s1658_s20 }
  0x43   : > { %p1656_p2 = pnand %p1655_p1, %p1885_p3  ;;  %s1660_s22 = scalar_lea.vmem %s1659_s20, 256 }
  0x44   : > { %682 = vmatpush1.bf16.msra.mxu0 %v1603_v51  ;;  %1506 = vmatpush1.bf16.msra.mxu1 %v1603_v51  ;;  %p1661_p5 = scmp.lt.s32.totalorder %s2221_s11, %s1659_s20  ;;  %p1662_p6 = scmp.lt.s32.totalorder %s1660_s22, %s1654_s13 }
  0x45   : > { %683 = vmatprep.subr.bf16.mxu0 %v1604_v52  ;;  %1499 = vmatprep.subr.bf16.mxu1 %v1604_v52  ;;  %v1422_v52 = vld [vmem:[%s2320_s2] ss:$0 sm:$0xff]  ;;  %p1657_p4 = pneg %p1656_p2 }
  0x46   : > { %p1663_p7 = por %p1662_p6, %p1661_p5 }
  0x48   : > { %684 = vmatpush1.bf16.msra.mxu0 %v1606_v53  ;;  %1507 = vmatpush1.bf16.msra.mxu1 %v1606_v53  ;;  %p1664_p9 = pnand %p1663_p7, %p1657_p4 }
  0x49   : > { %685 = vmatprep.subr.bf16.mxu0 %v1607_v54  ;;  %1500 = vmatprep.subr.bf16.mxu1 %v1607_v54 }
  0x4c   : > { %686 = vmatpush1.bf16.msra.mxu0 %v1609_v55  ;;  %1508 = vmatpush1.bf16.msra.mxu1 %v1609_v55 }
  0x4d   : > { %687 = vmatprep.subr.bf16.mxu0 %v1610_v56  ;;  %1501 = vmatprep.subr.bf16.mxu1 %v1610_v56 }
  0x50   : > { %688 = vmatpush1.bf16.msra.mxu0 %v1612_v57  ;;  %1509 = vmatpush1.bf16.msra.mxu1 %v1612_v57 }
  0x51   : > { %689 = vmatprep.subr.bf16.mxu0 %v1613_v58  ;;  %1502 = vmatprep.subr.bf16.mxu1 %v1613_v58 }
  0x54   : > { %690 = vmatpush1.bf16.msra.mxu0 %v1615_v60  ;;  %1510 = vmatpush1.bf16.msra.mxu1 %v1615_v60 }
  0xc7   : > { %v450_v20 = vpop.xlane.xlu1 %449  ;;  %v446_v21 = vpop.xlane.xlu0 %445 }
  0xc8   : > { %v1936_v22 = vmul.f32 0.125, %v450_v20  ;;  %v1938_v23 = vmul.f32 0.125, %v446_v21 }
  0xca   : > { %v1941_v24 = vsub.f32 %v439_v13, %v1938_v23  ;;  %v1944_v25 = vsub.f32 %v441_v12, %v1936_v22  ;;  %v490_v61 = vmul.f32 120.0, %v1938_v23  ;;  %v492_v0 = vmul.f32 120.0, %v1936_v22 }
  0xcb   : > { %v452_v26 = vpop.xlane.xlu1 %451  ;;  %v448_v27 = vpop.xlane.xlu0 %447 }
  0xcc   : > { %v1946_v28 = vmul.f32 0.125, %v452_v26  ;;  %v1948_v29 = vmul.f32 0.125, %v448_v27  ;;  %v471_v30 = vmul.f32 %v1941_v24, %v1941_v24  ;;  %v473_v31 = vmul.f32 %v1944_v25, %v1944_v25 }
  0xcd   : > { %v496_v62 = vmul.f32 %v490_v61, %v1938_v23  ;;  %v498_v6 = vmul.f32 %v492_v0, %v1936_v22 }
  0xce   : > { %477 = vadd.xlane.f32.xlu0 %v471_v30  ;;  %v1955_v32 = vsub.f32 %v440_v15, %v1948_v29  ;;  %v1958_v33 = vsub.f32 %v442_v14, %v1946_v28  ;;  %v491_v63 = vmul.f32 120.0, %v1948_v29  ;;  %v493_v3 = vmul.f32 120.0, %v1946_v28 }
  0xcf   : > { %v454_v34 = vpop.xlane.xlu1 %453  ;;  %v458_v35 = vpop.xlane.xlu0 %457 }
  0xd0   : > { %v1960_v36 = vmul.f32 0.125, %v454_v34  ;;  %v472_v37 = vmul.f32 %v1955_v32, %v1955_v32  ;;  %v1964_v38 = vmul.f32 0.125, %v458_v35  ;;  %v474_v40 = vmul.f32 %v1958_v33, %v1958_v33 }
  0xd1   : > { %v497_v5 = vmul.f32 %v491_v63, %v1948_v29  ;;  %v499_v13 = vmul.f32 %v493_v3, %v1946_v28 }
  0xd2   : > { %481 = vadd.xlane.f32.xlu0 %v473_v31  ;;  %479 = vadd.xlane.f32.xlu1 %v472_v37  ;;  %v1967_v39 = vsub.f32 %v443_v17, %v1960_v36  ;;  %v1972_v41 = vsub.f32 %v444_v16, %v1964_v38  ;;  %v494_v9 = vmul.f32 120.0, %v1960_v36  ;;  %v495_v17 = vmul.f32 120.0, %v1964_v38 }
  0xd4   : > { %v475_v42 = vmul.f32 %v1967_v39, %v1967_v39  ;;  %v476_v43 = vmul.f32 %v1972_v41, %v1972_v41  ;;  %v500_v19 = vmul.f32 %v494_v9, %v1960_v36  ;;  %v501_v31 = vmul.f32 %v495_v17, %v1964_v38  ;;  %v1421_v38 = vld [vmem:[%s2319_s1] ss:$0 sm:$0xff] }
  0xd5   : > { %v583_v9 = vld [vmem:[%s2322_s4] sm:$0x3] }
  0xd6   : > { %485 = vadd.xlane.f32.xlu0 %v475_v42  ;;  %483 = vadd.xlane.f32.xlu1 %v474_v40  ;;  %v487_v44 = vsel %vm455_vm0, %v476_v43, 0.0 }
  0xda   : > { %488 = vadd.xlane.f32.xlu1 %v487_v44 }
 0x15b   : > { %v478_v1 = vpop.xlane.xlu0 %477 }
 0x15c   : > { %v502_v2 = vsub.f32 %v478_v1, %v496_v62 }
 0x15e   : > { %v508_v4 = vmul.f32 0.125, %v502_v2 }
 0x15f   : > { %v480_v7 = vpop.xlane.xlu1 %479  ;;  %v482_v8 = vpop.xlane.xlu0 %481 }
 0x160   : > { %v514_v10 = vmax.f32 %v508_v4, 0.0  ;;  %v503_v11 = vsub.f32 %v480_v7, %v497_v5  ;;  %v504_v12 = vsub.f32 %v482_v8, %v498_v6  ;;  %v585_v7 = vlaneseq }
 0x162   : > { %v520_v14 = vadd.f32 1e-05, %v514_v10  ;;  %v509_v15 = vmul.f32 0.125, %v503_v11  ;;  %v510_v16 = vmul.f32 0.125, %v504_v12 }
 0x163   : > { %v484_v18 = vpop.xlane.xlu1 %483  ;;  %v486_v20 = vpop.xlane.xlu0 %485 }
 0x164   : > { %1616 = vrsqrt.f32 %v520_v14  ;;  %v515_v21 = vmax.f32 %v509_v15, 0.0  ;;  %v516_v22 = vmax.f32 %v510_v16, 0.0  ;;  %v505_v23 = vsub.f32 %v484_v18, %v499_v13 }
 0x165   : > { %v506_v26 = vsub.f32 %v486_v20, %v500_v19 }
 0x166   : > { %v521_v27 = vadd.f32 1e-05, %v515_v21  ;;  %v522_v29 = vadd.f32 1e-05, %v516_v22  ;;  %v511_v30 = vmul.f32 0.125, %v505_v23 }
 0x167   : > { %v512_v28 = vmul.f32 0.125, %v506_v26  ;;  %v489_v34 = vpop.xlane.xlu1 %488 }
 0x168   : > { %1618 = vrsqrt.f32 %v521_v27  ;;  %v517_v35 = vmax.f32 %v511_v30, 0.0  ;;  %v507_v37 = vsub.f32 %v489_v34, %v501_v31 }
 0x169   : > { %1620 = vrsqrt.f32 %v522_v29  ;;  %v518_v40 = vmax.f32 %v512_v28, 0.0 }
 0x16a   : > { %v523_v42 = vadd.f32 1e-05, %v517_v35  ;;  %v513_v36 = vmul.f32 0.125, %v507_v37 }
 0x16b   : > { %v524_v43 = vadd.f32 1e-05, %v518_v40 }
 0x16c   : > { %1622 = vrsqrt.f32 %v523_v42  ;;  %v519_v44 = vmax.f32 %v513_v36, 0.0 }
 0x16d   : > { %1624 = vrsqrt.f32 %v524_v43  ;;  %v787_v43 = vstv %s1420_s10 }
 0x16e   : > { %v1617_v45 = vpop.eup %1616  ;;  %v525_v46 = vadd.f32 1e-05, %v519_v44 }
 0x16f   : > { %v532_v47 = vmul.f32 %v1617_v45, %v1941_v24 }
 0x170   : > { %1626 = vrsqrt.f32 %v525_v46 }
 0x171   : > { %v545_v51 = vmul.f32 %v1421_v38, %v532_v47 }
 0x172   : > { %v1619_v48 = vpop.eup %1618 }
 0x173   : > { %v1621_v49 = vpop.eup %1620  ;;  %v533_v50 = vmul.f32 %v1619_v48, %v1955_v32  ;;  %v558_v24 = vadd.f32 %v1422_v52, %v545_v51 }
 0x174   : > { %v534_v53 = vmul.f32 %v1621_v49, %v1944_v25 }
 0x175   : > { %v546_v54 = vmul.f32 %v1421_v38, %v533_v50 }
 0x176   : > { %v1623_v55 = vpop.eup %1622  ;;  %v547_v60 = vmul.f32 %v1421_v38, %v534_v53 }
 0x177   : > { %v1625_v56 = vpop.eup %1624  ;;  %v559_v57 = vadd.f32 %v1422_v52, %v546_v54  ;;  %v535_v58 = vmul.f32 %v1623_v55, %v1958_v33 }
 0x178   : > { %v536_v61 = vmul.f32 %v1625_v56, %v1967_v39  ;;  %v560_v0 = vadd.f32 %v1422_v52, %v547_v60  ;;  %v2051_v39 = vshrl.u32 %v585_v7, 7 }
 0x179   : > { %v564_v62 = vpack.c.bf16 %v559_v57, %v558_v24  ;;  %v548_v63 = vmul.f32 %v1421_v38, %v535_v58 }
 0x17a   : > { %v1627_v32 = vpop.eup %1626  ;;  %v549_v3 = vmul.f32 %v1421_v38, %v536_v61  ;;  %v591_v8 = vsub.s32 1, %v2051_v39  ;;  %v587_v46 = vsub.s32 0, %v2051_v39  ;;  %v782_v47 = vadd.s32 8, %v2051_v39 }
 0x17b   : > { %708 = vmatmul.mubr.bf16.vlgmr.msra.gmra.mrb[0].mxu0 %v564_v62  ;;  %v561_v1 = vadd.f32 %v1422_v52, %v548_v63  ;;  %v537_v2 = vmul.f32 %v1627_v32, %v1972_v41  ;;  %v783_v48 = vadd.s32 16, %v2051_v39  ;;  %v2071_v50 = vadd.s32 %v787_v43, %v2051_v39 }
 0x17c   : > { %v562_v5 = vadd.f32 %v1422_v52, %v549_v3  ;;  %v592_v41 = vrot.slane %v583_v9, %v591_v8  ;;  %v588_v53 = vrot.slane %v583_v9, %v587_v46  ;;  %v2074_v54 = vadd.s32 %v787_v43, %v782_v47 }
 0x17d   : > { %v565_v25 = vpack.c.bf16 %v561_v1, %v560_v0  ;;  %v550_v4 = vmul.f32 %v1421_v38, %v537_v2  ;;  %v790_v55 = vadd.s32 %v787_v43, %v783_v48  ;;  %vm794_vm1 = vcmp.ge.s32.totalorder %v2071_v50, 15 }
 0x17e   : > { %vm800_vm2 = vcmp.lt.s32.totalorder %v2071_v50, 55  ;;  %vm795_vm3 = vcmp.ge.s32.totalorder %v2074_v54, 15  ;;  %vm801_vm4 = vcmp.lt.s32.totalorder %v2074_v54, 55  ;;  %v785_v32 = vadd.s32 32, %v2051_v39 }
 0x17f   : > { %718 = vmatmul.mubr.bf16.vlgmr.msra.gmra.mrb[0].mxu1 %v565_v25  ;;  %v563_v6 = vadd.f32 %v1422_v52, %v550_v4  ;;  %v784_v52 = vadd.s32 24, %v2051_v39  ;;  %vm806_vm5 = vmand %vm794_vm1, %vm800_vm2  ;;  %vm796_vm6 = vcmp.ge.s32.totalorder %v790_v55, 15  ;;  %vm802_vm7 = vcmp.lt.s32.totalorder %v790_v55, 55 }
 0x180   : > { %727 = vmatprep.mubr.bf16.mxu1 %v1784_v59  ;;  %vm807_vm8 = vmand %vm795_vm3, %vm801_vm4  ;;  %v786_v4 = vadd.s32 40, %v2051_v39  ;;  %v792_v8 = vadd.s32 %v787_v43, %v785_v32  ;;  %vm1164_vm3 = vcmp.lt.s32.totalorder %v2071_v50, 40  ;;  %vm1165_vm4 = vcmp.lt.s32.totalorder %v2074_v54, 40 }
 0x181   : > { %v566_v33 = vpack.c.bf16 %v563_v6, %v562_v5  ;;  %v791_v56 = vadd.s32 %v787_v43, %v784_v52  ;;  %vm808_vm11 = vmand %vm796_vm6, %vm802_vm7 }
 0x182   : > { %vm798_vm13 = vcmp.ge.s32.totalorder %v792_v8, 15  ;;  %vm804_vm14 = vcmp.lt.s32.totalorder %v792_v8, 55 }
 0x183   : > { %vm797_vm9 = vcmp.ge.s32.totalorder %v791_v56, 15  ;;  %vm803_vm10 = vcmp.lt.s32.totalorder %v791_v56, 55  ;;  %vm810_vm1 = vmand %vm798_vm13, %vm804_vm14 }
 0x184   : > { %vm809_vm12 = vmand %vm797_vm9, %vm803_vm10 }
 0x187   : > { %728 = vmatmul.mubr.bf16.gmra.mrb[4].mxu1 %v566_v33 }
 0x24e   : > { %v709_v10 = vpop.f32.mrb[0].mxu0 }
 0x24f   : > { %v711_v11 = vpop.f32.mrb[1].mxu0  ;;  %v710_v57 = vadd.f32 %v709_v10, %v588_v53  ;;  %v793_v10 = vadd.s32 %v787_v43, %v786_v4 }
 0x250   : > { %v712_v12 = vadd.f32 %v711_v11, %v592_v41  ;;  %v713_v13 = vpop.f32.mrb[2].mxu0 }
 0x251   : > { %v715_v14 = vpop.f32.mrb[3].mxu0  ;;  %v714_v63 = vadd.f32 %v713_v13, %v588_v53  ;;  %vm799_vm15 = vcmp.ge.s32.totalorder %v793_v10, 15  ;;  %vm805_vm0 = vcmp.lt.s32.totalorder %v793_v10, 55  ;;  %v1445_v13 = vld [vmem:[%s2323_s5] ss:$0 sm:$0xff] }
 0x252   : > { %v1439_v15 = vmul.f32 -1.442695, %v712_v12  ;;  %v716_v16 = vadd.f32 %v715_v14, %v592_v41  ;;  %v2057_v59 = vpop.f32.mrb[0].mxu1  ;;  %v1446_v14 = vld [vmem:[%s2323_s5 + $0x1] ss:$0 sm:$0xff]  ;;  %vm2107_vm2 = vmand %vm799_vm15, %vm805_vm0 }
 0x253   : > { %v721_v17 = vpop.f32.mrb[1].mxu1  ;;  %v720_v25 = vadd.f32 %v2057_v59, %v588_v53  ;;  %v1454_v10 = vld [vmem:[%s2323_s5 + $0x9] ss:$0 sm:$0xff] }
 0x254   : > { %1628 = vpow2.f32 %v1439_v15  ;;  %v1440_v18 = vmul.f32 -1.442695, %v716_v16  ;;  %v722_v19 = vadd.f32 %v721_v17, %v592_v41  ;;  %v2059_v20 = vpop.f32.mrb[2].mxu1 }
 0x255   : > { %v725_v21 = vpop.f32.mrb[3].mxu1  ;;  %v724_v7 = vadd.f32 %v2059_v20, %v588_v53 }
 0x256   : > { %1630 = vpow2.f32 %v1440_v18  ;;  %v1441_v22 = vmul.f32 -1.442695, %v722_v19  ;;  %v726_v23 = vadd.f32 %v725_v21, %v592_v41  ;;  %v1447_v19 = vld [vmem:[%s2323_s5 + $0x2] ss:$0 sm:$0xff] }
 0x258   : > { %1632 = vpow2.f32 %v1441_v22  ;;  %v1442_v26 = vmul.f32 -1.442695, %v726_v23 }
 0x25a   : > { %1634 = vpow2.f32 %v1442_v26  ;;  %v2061_v27 = vpop.f32.mrb[4].mxu1  ;;  %v1448_v26 = vld [vmem:[%s2323_s5 + $0x3] ss:$0 sm:$0xff] }
 0x25b   : > { %v731_v29 = vpop.f32.mrb[5].mxu1  ;;  %v730_v12 = vadd.f32 %v2061_v27, %v588_v53 }
 0x25c   : > { %v732_v30 = vadd.f32 %v731_v29, %v592_v41  ;;  %v2063_v31 = vpop.f32.mrb[6].mxu1 }
 0x25d   : > { %v735_v28 = vpop.f32.mrb[7].mxu1  ;;  %v734_v59 = vadd.f32 %v2063_v31, %v588_v53 }
 0x25e   : > { %v1629_v34 = vpop.eup %1628  ;;  %v1443_v35 = vmul.f32 -1.442695, %v732_v30  ;;  %v736_v37 = vadd.f32 %v735_v28, %v592_v41 }
 0x25f   : > { %v756_v40 = vadd.f32 1.0, %v1629_v34 }
 0x260   : > { %v1631_v42 = vpop.eup %1630  ;;  %1636 = vpow2.f32 %v1443_v35  ;;  %v1444_v36 = vmul.f32 -1.442695, %v736_v37 }
 0x261   : > { %1638 = vrcp.f32 %v756_v40  ;;  %v757_v44 = vadd.f32 1.0, %v1631_v42 }
 0x262   : > { %v1633_v45 = vpop.eup %1632  ;;  %1640 = vpow2.f32 %v1444_v36 }
 0x263   : > { %1642 = vrcp.f32 %v757_v44  ;;  %v758_v38 = vadd.f32 1.0, %v1633_v45  ;;  %v1449_v44 = vld [vmem:[%s2323_s5 + $0x4] ss:$0 sm:$0xff] }
 0x264   : > { %v1635_v49 = vpop.eup %1634 }
 0x265   : > { %1644 = vrcp.f32 %v758_v38  ;;  %v759_v51 = vadd.f32 1.0, %v1635_v49 }
 0x267   : > { %1646 = vrcp.f32 %v759_v51  ;;  %v1450_v51 = vld [vmem:[%s2323_s5 + $0x5] ss:$0 sm:$0xff] }
 0x26a   : > { %v1637_v24 = vpop.eup %1636 }
 0x26b   : > { %v1639_v58 = vpop.eup %1638  ;;  %v760_v60 = vadd.f32 1.0, %v1637_v24 }
 0x26c   : > { %v1641_v61 = vpop.eup %1640  ;;  %v774_v62 = vmul.f32 %v1639_v58, %v710_v57  ;;  %v1451_v58 = vld [vmem:[%s2323_s5 + $0x6] ss:$0 sm:$0xff] }
 0x26d   : > { %v1643_v0 = vpop.eup %1642  ;;  %1648 = vrcp.f32 %v760_v60  ;;  %v761_v1 = vadd.f32 1.0, %v1641_v61 }
 0x26e   : > { %v824_v2 = vsel %vm806_vm5, %v774_v62, 0.0  ;;  %v775_v3 = vmul.f32 %v1643_v0, %v714_v63 }
 0x26f   : > { %v1645_v5 = vpop.eup %1644  ;;  %830 = vst [vmem:[#allocation3] sm:$0xff] %v824_v2  ;;  %1650 = vrcp.f32 %v761_v1  ;;  %v843_v22 = vmul.f32 %v1445_v13, %v824_v2  ;;  %v1452_v1 = vld [vmem:[%s2323_s5 + $0x7] ss:$0 sm:$0xff] }
 0x270   : > { %v2084_v6 = vsel %vm807_vm8, %v775_v3, 0.0  ;;  %v776_v33 = vmul.f32 %v1645_v5, %v720_v25 }
 0x271   : > { %v1647_v9 = vpop.eup %1646  ;;  %831 = vst [vmem:[#allocation3 + $0x8] sm:$0xff] %v2084_v6  ;;  %v844_v34 = vmul.f32 %v1445_v13, %v2084_v6 }
 0x272   : > { %v2090_v41 = vsel %vm808_vm11, %v776_v33, 0.0  ;;  %v777_v39 = vmul.f32 %v1647_v9, %v724_v7  ;;  %v1453_v33 = vld [vmem:[%s2323_s5 + $0x8] ss:$0 sm:$0xff] }
 0x273   : > { %832 = vst [vmem:[#allocation3 + $0x10] sm:$0xff] %v2090_v41 }
 0x274   : > { %v2093_v11 = vsel %vm809_vm12, %v777_v39, 0.0 }
 0x275   : > { %833 = vst [vmem:[#allocation3 + $0x18] sm:$0xff] %v2093_v11 }
 0x277   : > { %v1649_v15 = vpop.eup %1648 }
 0x278   : > { %v778_v16 = vmul.f32 %v1649_v15, %v730_v12  ;;  %v847_v17 = vld [vmem:[#allocation3 + $0x1] sm:$0xff]  ;;  %v930_v15 = vmul.f32 %v1453_v33, %v2084_v6 }
 0x279   : > { %v858_v18 = vld [vmem:[#allocation3 + $0x2] sm:$0xff]  ;;  %v1651_v20 = vpop.eup %1650  ;;  %v854_v23 = vmul.f32 %v1446_v14, %v847_v17 }
 0x27a   : > { %v2114_v27 = vsel %vm810_vm1, %v778_v16, 0.0  ;;  %v779_v29 = vmul.f32 %v1651_v20, %v734_v59  ;;  %v848_v30 = vld [vmem:[#allocation3 + $0x9] sm:$0xff]  ;;  %v865_v40 = vmul.f32 %v1447_v19, %v858_v18  ;;  %v931_v18 = vmul.f32 %v1453_v33, %v2090_v41 }
 0x27b   : > { %v859_v31 = vld [vmem:[#allocation3 + $0xa] sm:$0xff]  ;;  %834 = vst [vmem:[#allocation3 + $0x20] sm:$0xff] %v2114_v27  ;;  %v855_v35 = vmul.f32 %v1446_v14, %v848_v30  ;;  %v856_v37 = vadd.f32 %v854_v23, %v843_v22  ;;  %v940_v20 = vmul.f32 %v1454_v10, %v848_v30 }
 0x27c   : > { %v869_v28 = vld [vmem:[#allocation3 + $0x3] sm:$0xff]  ;;  %v829_v42 = vsel %vm2107_vm2, %v779_v29, 0.0  ;;  %v870_v36 = vld [vmem:[#allocation3 + $0xb] sm:$0xff]  ;;  %v866_v46 = vmul.f32 %v1447_v19, %v859_v31  ;;  %v954_v6 = vld [vmem:[#allocation3 + $0x13] sm:$0xff] }
 0x27d   : > { %v880_v43 = vld [vmem:[#allocation3 + $0x4] sm:$0xff]  ;;  %835 = vst [vmem:[#allocation3 + $0x28] sm:$0x3f] %v829_v42  ;;  %v857_v45 = vadd.f32 %v855_v35, %v844_v34  ;;  %v867_v47 = vadd.f32 %v865_v40, %v856_v37  ;;  %v876_v38 = vmul.f32 %v1448_v26, %v869_v28  ;;  %v881_v48 = vld [vmem:[#allocation3 + $0xc] sm:$0xff]  ;;  %v877_v53 = vmul.f32 %v1448_v26, %v870_v36 }
 0x27e   : > { %v891_v49 = vld [vmem:[#allocation3 + $0x5] sm:$0xff]  ;;  %v887_v56 = vmul.f32 %v1449_v44, %v880_v43  ;;  %v892_v24 = vld [vmem:[#allocation3 + $0xd] sm:$0xff]  ;;  %v888_v61 = vmul.f32 %v1449_v44, %v881_v48 }
 0x27f   : > { %v868_v52 = vadd.f32 %v866_v46, %v857_v45  ;;  %v878_v55 = vadd.f32 %v876_v38, %v867_v47  ;;  %v902_v57 = vld [vmem:[#allocation3 + $0x6] sm:$0xff]  ;;  %v898_v63 = vmul.f32 %v1450_v51, %v891_v49  ;;  %v903_v32 = vld [vmem:[#allocation3 + $0xe] sm:$0xff]  ;;  %v899_v3 = vmul.f32 %v1450_v51, %v892_v24 }
 0x280   : > { %v913_v0 = vld [vmem:[#allocation3 + $0x7] sm:$0xff]  ;;  %v909_v4 = vmul.f32 %v1451_v58, %v902_v57  ;;  %v914_v5 = vld [vmem:[#allocation3 + $0xf] sm:$0xff]  ;;  %v910_v8 = vmul.f32 %v1451_v58, %v903_v32 }
 0x281   : > { %v879_v60 = vadd.f32 %v877_v53, %v868_v52  ;;  %v889_v62 = vadd.f32 %v887_v56, %v878_v55  ;;  %v920_v39 = vmul.f32 %v1452_v1, %v913_v0  ;;  %v921_v13 = vmul.f32 %v1452_v1, %v914_v5  ;;  %v934_v16 = vld [vmem:[#allocation3 + $0x11] sm:$0xff]  ;;  %v1455_v59 = vld [vmem:[%s2323_s5 + $0xa] ss:$0 sm:$0xff]  ;;  %v1456_v22 = vld [vmem:[%s2323_s5 + $0xb] ss:$0 sm:$0xff] }
 0x282   : > { %v944_v21 = vld [vmem:[#allocation3 + $0x12] sm:$0xff]  ;;  %v941_v26 = vmul.f32 %v1454_v10, %v934_v16  ;;  %v950_v28 = vmul.f32 %v1455_v59, %v859_v31  ;;  %v1457_v34 = vld [vmem:[%s2323_s5 + $0xc] ss:$0 sm:$0xff]  ;;  %v960_v42 = vmul.f32 %v1456_v22, %v870_v36  ;;  %v1458_v30 = vld [vmem:[%s2323_s5 + $0xd] ss:$0 sm:$0xff]  ;;  %v961_v45 = vmul.f32 %v1456_v22, %v954_v6 }
 0x283   : > { %v890_v2 = vadd.f32 %v888_v61, %v879_v60  ;;  %v900_v25 = vadd.f32 %v898_v63, %v889_v62  ;;  %v951_v37 = vmul.f32 %v1455_v59, %v944_v21  ;;  %v964_v43 = vld [vmem:[#allocation3 + $0x14] sm:$0xff]  ;;  %v970_v47 = vmul.f32 %v1457_v34, %v881_v48  ;;  %v1459_v31 = vld [vmem:[%s2323_s5 + $0xe] ss:$0 sm:$0xff]  ;;  %v1460_v36 = vld [vmem:[%s2323_s5 + $0xf] ss:$0 sm:$0xff] }
 0x284   : > { %v974_v38 = vld [vmem:[#allocation3 + $0x15] sm:$0xff]  ;;  %v971_v51 = vmul.f32 %v1457_v34, %v964_v43  ;;  %v980_v53 = vmul.f32 %v1458_v30, %v892_v24  ;;  %v990_v60 = vmul.f32 %v1459_v31, %v903_v32  ;;  %v1461_v48 = vld [vmem:[%s2323_s5 + $0x10] ss:$0 sm:$0xff]  ;;  %v1000_v1 = vmul.f32 %v1460_v36, %v914_v5  ;;  %v1462_v24 = vld [vmem:[%s2323_s5 + $0x11] ss:$0 sm:$0xff] }
 0x285   : > { %v901_v7 = vadd.f32 %v899_v3, %v890_v2  ;;  %v911_v9 = vadd.f32 %v909_v4, %v900_v25  ;;  %v984_v55 = vld [vmem:[#allocation3 + $0x16] sm:$0xff]  ;;  %v981_v57 = vmul.f32 %v1458_v30, %v974_v38  ;;  %v1010_v4 = vmul.f32 %v1461_v48, %v2090_v41  ;;  %v1463_v32 = vld [vmem:[%s2323_s5 + $0x12] ss:$0 sm:$0xff]  ;;  %v1464_v10 = vld [vmem:[%s2323_s5 + $0x13] ss:$0 sm:$0xff] }
 0x286   : > { %v994_v61 = vld [vmem:[#allocation3 + $0x17] sm:$0xff]  ;;  %v991_v63 = vmul.f32 %v1459_v31, %v984_v55  ;;  %v1465_v59 = vld [vmem:[%s2323_s5 + $0x14] ss:$0 sm:$0xff]  ;;  %v1074_v31 = vld [vmem:[#allocation3 + $0x1f] sm:$0xff] }
 0x287   : > { %v912_v12 = vadd.f32 %v910_v8, %v901_v7  ;;  %v922_v14 = vadd.f32 %v920_v39, %v911_v9  ;;  %v1001_v3 = vmul.f32 %v1460_v36, %v994_v61  ;;  %v1014_v33 = vld [vmem:[#allocation3 + $0x19] sm:$0xff]  ;;  %v1011_v8 = vmul.f32 %v1461_v48, %v2093_v11 }
 0x288   : > { %v1020_v39 = vmul.f32 %v1462_v24, %v934_v16  ;;  %v1024_v5 = vld [vmem:[#allocation3 + $0x1a] sm:$0xff]  ;;  %v1466_v16 = vld [vmem:[%s2323_s5 + $0x15] ss:$0 sm:$0xff] }
 0x289   : > { %v923_v17 = vadd.f32 %v921_v13, %v912_v12  ;;  %v932_v19 = vadd.f32 %v930_v15, %v922_v14  ;;  %v1021_v13 = vmul.f32 %v1462_v24, %v1014_v33  ;;  %v1030_v15 = vmul.f32 %v1463_v32, %v944_v21  ;;  %v1034_v41 = vld [vmem:[#allocation3 + $0x1b] sm:$0xff]  ;;  %v1467_v21 = vld [vmem:[%s2323_s5 + $0x16] ss:$0 sm:$0xff] }
 0x28a   : > { %v1044_v22 = vld [vmem:[#allocation3 + $0x1c] sm:$0xff] }
 0x28b   : > { %v933_v23 = vadd.f32 %v931_v18, %v923_v17  ;;  %v942_v29 = vadd.f32 %v940_v20, %v932_v19  ;;  %v1031_v18 = vmul.f32 %v1463_v32, %v1024_v5  ;;  %v1040_v20 = vmul.f32 %v1464_v10, %v954_v6  ;;  %v1054_v34 = vld [vmem:[#allocation3 + $0x1d] sm:$0xff]  ;;  %v1468_v6 = vld [vmem:[%s2323_s5 + $0x17] ss:$0 sm:$0xff] }
 0x28c   : > { %v1064_v30 = vld [vmem:[#allocation3 + $0x1e] sm:$0xff] }
 0x28d   : > { %v943_v35 = vadd.f32 %v941_v26, %v933_v23  ;;  %v952_v40 = vadd.f32 %v950_v28, %v942_v29  ;;  %v1041_v26 = vmul.f32 %v1464_v10, %v1034_v41  ;;  %v1050_v28 = vmul.f32 %v1465_v59, %v964_v43  ;;  %v1469_v43 = vld [vmem:[%s2323_s5 + $0x18] ss:$0 sm:$0xff] }
 0x28f   : > { %v953_v44 = vadd.f32 %v951_v37, %v943_v35  ;;  %v962_v46 = vadd.f32 %v960_v42, %v952_v40  ;;  %v1051_v37 = vmul.f32 %v1465_v59, %v1044_v22  ;;  %v1060_v42 = vmul.f32 %v1466_v16, %v974_v38  ;;  %v1470_v38 = vld [vmem:[%s2323_s5 + $0x19] ss:$0 sm:$0xff] }
 0x291   : > { %v963_v49 = vadd.f32 %v961_v45, %v953_v44  ;;  %v972_v52 = vadd.f32 %v970_v47, %v962_v46  ;;  %v1061_v45 = vmul.f32 %v1466_v16, %v1054_v34  ;;  %v1070_v47 = vmul.f32 %v1467_v21, %v984_v55  ;;  %v1094_v55 = vld [vmem:[#allocation3 + $0x21] sm:$0xff] }
 0x293   : > { %v973_v56 = vadd.f32 %v971_v51, %v963_v49  ;;  %v982_v58 = vadd.f32 %v980_v53, %v972_v52  ;;  %v1071_v51 = vmul.f32 %v1467_v21, %v1064_v30  ;;  %v1080_v53 = vmul.f32 %v1468_v6, %v994_v61 }
 0x294   : > { %v1100_v61 = vmul.f32 %v1470_v38, %v1014_v33 }
 0x295   : > { %v983_v62 = vadd.f32 %v981_v57, %v973_v56  ;;  %v992_v0 = vadd.f32 %v990_v60, %v982_v58  ;;  %v1081_v56 = vmul.f32 %v1468_v6, %v1074_v31  ;;  %v1090_v58 = vmul.f32 %v1469_v43, %v2093_v11  ;;  %v1471_v60 = vld [vmem:[%s2323_s5 + $0x1a] ss:$0 sm:$0xff]  ;;  %v1114_v11 = vld [vmem:[#allocation3 + $0x23] sm:$0xff] }
 0x297   : > { %v993_v2 = vadd.f32 %v991_v63, %v983_v62  ;;  %v1002_v25 = vadd.f32 %v1000_v1, %v992_v0  ;;  %v1091_v62 = vmul.f32 %v1469_v43, %v2114_v27  ;;  %v1104_v0 = vld [vmem:[#allocation3 + $0x22] sm:$0xff]  ;;  %v1472_v1 = vld [vmem:[%s2323_s5 + $0x1b] ss:$0 sm:$0xff] }
 0x298   : > { %v1111_v27 = vmul.f32 %v1471_v60, %v1104_v0 }
 0x299   : > { %v1003_v7 = vadd.f32 %v1001_v3, %v993_v2  ;;  %v1012_v9 = vadd.f32 %v1010_v4, %v1002_v25  ;;  %v1101_v2 = vmul.f32 %v1470_v38, %v1094_v55  ;;  %v1110_v25 = vmul.f32 %v1471_v60, %v1024_v5  ;;  %v1473_v4 = vld [vmem:[%s2323_s5 + $0x1c] ss:$0 sm:$0xff] }
 0x29a   : > { %v1121_v5 = vmul.f32 %v1472_v1, %v1114_v11 }
 0x29b   : > { %v1013_v12 = vadd.f32 %v1011_v8, %v1003_v7  ;;  %v1022_v14 = vadd.f32 %v1020_v39, %v1012_v9  ;;  %v1120_v7 = vmul.f32 %v1472_v1, %v1034_v41  ;;  %v1124_v8 = vld [vmem:[#allocation3 + $0x24] sm:$0xff]  ;;  %v1474_v9 = vld [vmem:[%s2323_s5 + $0x1d] ss:$0 sm:$0xff] }
 0x29c   : > { %v1131_v59 = vmul.f32 %v1473_v4, %v1124_v8  ;;  %v1140_v41 = vmul.f32 %v1474_v9, %v1054_v34 }
 0x29d   : > { %v1023_v17 = vadd.f32 %v1021_v13, %v1013_v12  ;;  %v1032_v19 = vadd.f32 %v1030_v15, %v1022_v14  ;;  %v1130_v12 = vmul.f32 %v1473_v4, %v1044_v22  ;;  %v1134_v13 = vld [vmem:[#allocation3 + $0x25] sm:$0xff]  ;;  %v1475_v14 = vld [vmem:[%s2323_s5 + $0x1e] ss:$0 sm:$0xff]  ;;  %v1476_v22 = vld [vmem:[%s2324_s6] ss:$0 sm:$0xff] }
 0x29f   : > { %v1033_v23 = vadd.f32 %v1031_v18, %v1023_v17  ;;  %v1042_v29 = vadd.f32 %v1040_v20, %v1032_v19  ;;  %v1145_v18 = vld [vmem:[#allocation3 + $0x26] sm:$0xff]  ;;  %v1141_v20 = vmul.f32 %v1474_v9, %v1134_v13 }
 0x2a1   : > { %v1043_v35 = vadd.f32 %v1041_v26, %v1033_v23  ;;  %v1052_v40 = vadd.f32 %v1050_v28, %v1042_v29  ;;  %v1151_v23 = vmul.f32 %v1475_v14, %v1064_v30  ;;  %v1152_v29 = vmul.f32 %v1475_v14, %v1145_v18 }
 0x2a3   : > { %v1053_v44 = vadd.f32 %v1051_v37, %v1043_v35  ;;  %v1062_v46 = vadd.f32 %v1060_v42, %v1052_v40  ;;  %v1193_v37 = vstv %s1185_s26 }
 0x2a4   : > { %1652 = vrcp.f32 %v1193_v37 }
 0x2a5   : > { %v1063_v49 = vadd.f32 %v1061_v45, %v1053_v44  ;;  %v1072_v52 = vadd.f32 %v1070_v47, %v1062_v46 }
 0x2a7   : > { %v1073_v36 = vadd.f32 %v1071_v51, %v1063_v49  ;;  %v1082_v57 = vadd.f32 %v1080_v53, %v1072_v52 }
 0x2a9   : > { %v1083_v48 = vadd.f32 %v1081_v56, %v1073_v36  ;;  %v1092_v63 = vadd.f32 %v1090_v58, %v1082_v57 }
 0x2ab   : > { %v1093_v24 = vadd.f32 %v1091_v62, %v1083_v48  ;;  %v1102_v3 = vadd.f32 %v1100_v61, %v1092_v63 }
 0x2ad   : > { %v1103_v32 = vadd.f32 %v1101_v2, %v1093_v24  ;;  %v1112_v33 = vadd.f32 %v1110_v25, %v1102_v3 }
 0x2af   : > { %v1113_v39 = vadd.f32 %v1111_v27, %v1103_v32  ;;  %v1122_v10 = vadd.f32 %v1120_v7, %v1112_v33 }
 0x2b1   : > { %v1123_v15 = vadd.f32 %v1121_v5, %v1113_v39  ;;  %v1132_v17 = vadd.f32 %v1130_v12, %v1122_v10 }
 0x2b3   : > { %v1133_v19 = vadd.f32 %v1131_v59, %v1123_v15  ;;  %v1142_v16 = vadd.f32 %v1140_v41, %v1132_v17 }
 0x2b5   : > { %v1143_v26 = vadd.f32 %v1141_v20, %v1133_v19  ;;  %v1153_v28 = vadd.f32 %v1151_v23, %v1142_v16 }
 0x2b7   : > { %v1154_v34 = vadd.f32 %v1152_v29, %v1143_v26  ;;  %v1162_v21 = vadd.f32 %v1476_v22, %v1153_v28 }
 0x2b9   : > { %v1163_v35 = vadd.f32 %v1476_v22, %v1154_v34  ;;  %v1170_v40 = vsel %vm1164_vm3, %v1162_v21, 0.0 }
 0x2bb   : > { %v1171_v42 = vsel %vm1165_vm4, %v1163_v35, 0.0 }
 0x2bc   : > { %v1493_v30 = vpack.c.bf16 %v1171_v42, %v1170_v40  ;;  %v1186_v6 = vadd.f32 %v1171_v42, %v1170_v40 }
 0x2be   : > { %1494 = vst [vmem:[%s1913_s14] sm:$0xff] %v1493_v30   ;;  %v1187_v44 = vrot.slane %v1186_v6, 4 }
 0x2bf   : > { %1667 = shalt.err (!%p1664_p9)
}
 0x2c0   : > { %s1668_s14 = scalar_lea.hbm %s2226_s17, 128  ;;  %s1672_s21 = scalar_lea.hbm %s2325_s7, 768 }
 0x2c1   : > { %p1669_p10 = scmp.ne.s32.totalorder %s2226_s17, %s1668_s14  ;;  %p1673_p13 = scmp.lt.u32.totalorder %s2226_s17, %s2325_s7 }
 0x2c2   : > { %p1674_p0 = scmp.lt.u32.totalorder %s1672_s21, %s1668_s14  ;;  %p1676_p2 = scmp.lt.u32.totalorder %s1668_s14, %s2226_s17 }
 0x2c3   : > { %p1670_p11 = pnand %p1669_p10, %p1885_p3 }
 0x2c4   : > { %p1675_p1 = por %p1674_p0, %p1673_p13 }
 0x2c5   : > { %p1671_p12 = pneg %p1670_p11 }
 0x2c6   : > { %p1677_p4 = por %p1676_p2, %p1675_p1 }
 0x2c8   : > { %p1678_p5 = pnand %p1677_p4, %p1671_p12 }
 0x2ca   : > { %1681 = shalt.err (!%p1678_p5)
}
 0x2cb   : > { %s1786_s13 = smov 64   ;;  %s1787_s20 = smov 4   ;;  %v1188_v45 = vadd.f32 %v1187_v44, %v1186_v6  ;;  %v1653_v43 = vpop.eup %1652  ;;  %vm1209_vm5 = vcmask 1040384  }
 0x2cc   : > { %1513 = dma.vmem_to_hbm [thread:$0]  (%p1885_p3), %s2221_s11, 128, %s2226_s17, %s1213_s23, %s1786_s13, %s1786_s13, %s1787_s20  }
 0x2cd   : > { %v1189_v46 = vrot.slane %v1188_v45, 2  ;;  %s1512_s11 = smul.u32 3, %s1770_s9  ;;  %s1251_s22 = sshll.u32 %s1915_s16, 4  ;;  %s2265_s22 = int_to_ptr.vmem [resolvable:$true] %s1251_s22 }
 0x2ce   : > { %s1218_s9 = scalar_lea.sflag [#allocation8], %s1906_s24  ;;  %s1788_s21 = smov [#allocation7]  }
 0x2cf   : > { %v1190_v47 = vadd.f32 %v1189_v46, %v1188_v45  ;;  %s1247_s17 = sadd.s32 %s1766_s30, %s1512_s11  ;;  %s1682_s30 = scalar_lea.vmem %s2265_s22, 32 }
 0x2d0   : > { %s1483_s23 = sshll.u32 %s1247_s17, 5  ;;  %p1683_p6 = scmp.ne.s32.totalorder %s2265_s22, %s1682_s30 }
 0x2d1   : > { %v1191_v31 = vrot.slane %v1190_v47, 1  ;;  %s2263_s15 = scalar_lea.hbm %s2326_s8, %s1483_s23  ;;  %s1686_s10 = sshll.u32 %s1788_s21, 4  ;;  %s1687_s10 = int_to_ptr.vmem [resolvable:$false] %s1686_s10 }
 0x2d2   : > { %p1684_p7 = pnand %p1683_p6, %p1885_p3  ;;  %s1688_s25 = scalar_lea.vmem %s1687_s10, 64 }
 0x2d3   : > { %v1192_v49 = vadd.f32 %v1191_v31, %v1190_v47  ;;  %p1689_p10 = scmp.lt.s32.totalorder %s2265_s22, %s1687_s10  ;;  %p1690_p11 = scmp.lt.s32.totalorder %s1688_s25, %s1682_s30 }
 0x2d4   : > { %p1685_p9 = pneg %p1684_p7 }
 0x2d5   : > { %v1195_v51 = vmul.f32 %v1653_v43, %v1192_v49  ;;  %p1691_p12 = por %p1690_p11, %p1689_p10 }
 0x2d7   : > { %v1196_v52 = vsub.f32 %v1170_v40, %v1195_v51  ;;  %v1197_v53 = vsub.f32 %v1171_v42, %v1195_v51  ;;  %p1692_p13 = pnand %p1691_p12, %p1685_p9 }
 0x2d9   : > { %v1198_v38 = vsel %vm1164_vm3, %v1196_v52, 0.0  ;;  %v1199_v36 = vsel %vm1165_vm4, %v1197_v53, 0.0 }
 0x2da   : > { %v1200_v56 = vmul.f32 %v1198_v38, %v1198_v38  ;;  %v1201_v57 = vmul.f32 %v1199_v36, %v1199_v36 }
 0x2dc   : > { %v1202_v58 = vadd.f32 %v1201_v57, %v1200_v56 }
 0x2de   : > { %v1203_v55 = vrot.slane %v1202_v58, 4 }
 0x2e0   : > { %v1204_v60 = vadd.f32 %v1203_v55, %v1202_v58 }
 0x2e2   : > { %v1205_v48 = vrot.slane %v1204_v60, 2 }
 0x2e4   : > { %v1206_v62 = vadd.f32 %v1205_v48, %v1204_v60 }
 0x2e6   : > { %v1207_v63 = vrot.slane %v1206_v62, 1 }
 0x2e8   : > { %v1208_v50 = vadd.f32 %v1207_v63, %v1206_v62 }
 0x2ea   : > { %v1210_v54 = vsel %vm1209_vm5, %v1192_v49, %v1208_v50 }
 0x2eb   : > { %1211 = vst [vmem:[%s1915_s16] sm:$0x3] %v1210_v54 }
 0x2ec   : > { %1695 = shalt.err (!%p1692_p13)
}
 0x2ed   : > { %s1696_s16 = scalar_lea.hbm %s2263_s15, 32  ;;  %s1700_s20 = scalar_lea.hbm %s2326_s8, 192 }
 0x2ee   : > { %p1697_p0 = scmp.ne.s32.totalorder %s2263_s15, %s1696_s16  ;;  %p1701_p4 = scmp.lt.u32.totalorder %s2263_s15, %s2326_s8 }
 0x2ef   : > { %p1702_p5 = scmp.lt.u32.totalorder %s1700_s20, %s1696_s16  ;;  %p1704_p7 = scmp.lt.u32.totalorder %s1696_s16, %s2263_s15 }
 0x2f0   : > { %p1698_p1 = pnand %p1697_p0, %p1885_p3 }
 0x2f1   : > { %p1703_p6 = por %p1702_p5, %p1701_p4 }
 0x2f2   : > { %p1699_p2 = pneg %p1698_p1 }
 0x2f3   : > { %p1705_p9 = por %p1704_p7, %p1703_p6 }
 0x2f5   : > { %p1706_p10 = pnand %p1705_p9, %p1699_p2 }
 0x2f7   : > { %1709 = shalt.err (!%p1706_p10)
}
 0x2f8   : > { %1514 = dma.vmem_to_hbm [thread:$0]  (%p1885_p3), %s2265_s22, 32, %s2263_s15, %s1218_s9  }
 0x2f9 PF: > { %p1524_p11 = scmp.ge.s32.totalorder %s1782_s12, 2  ;;  %s1263_s23 = sand.u32 1, %s1754_s27  }
 0x2fa   : > { %s1264_s14 = scalar_lea.sflag [#allocation6], %s1263_s23 }
 0x2fb   : > { %p1518_p12 = pnand %p1524_p11, %p1894_p8 }
 0x2fd   : > { %1745 = dma.done.wait (!%p1518_p12), %s1264_s14, 128  }
 0x2fe   : > { %1747 = vsyncadd (!%p1518_p12), %s1264_s14, 4294967168  ;;  %s1273_s26 = scalar_lea.sflag [#allocation8], %s1263_s23 }
 0x2ff   : > { %1749 = dma.done.wait (!%p1518_p12), %s1273_s26, 32  }
 0x300   : > { %1751 = vsyncadd (!%p1518_p12), %s1273_s26, 4294967264  ;;  %s25_s12 = sadd.s32 1, %s1782_s12   ;;  %s2340_s18 = sld [smem:[#allocation18_spill]] }
 0x301   : > { %p22_p13 = scmp.ge.s32.totalorder %s25_s12, 8   ;;  %s2341_s30 = sld [smem:[#allocation14_spill]] }
 0x302   : > { %s2342_s9 = sld [smem:[#allocation15_spill]]  ;;  %s2343_s10 = sld [smem:[#allocation16_spill]] }
 0x303   : > { %s2344_s11 = sld [smem:[#allocation17_spill]]  ;;  %s2345_s27 = smov %s1758_s28 }
 0x304   : > { %s2346_s28 = smov %s1762_s29  ;;  %24 = sbr.rel (!%p22_p13) target bundleno = 7 (0x7), region = 210 }
 0x306   : > { %s2347_s29 = smov %s2340_s18 }
 0x30b   :  { %1278 = vsyncpa [#allocation6], 1 }
 0x30c   :  { %1280 = vsyncpa [#allocation6 + $0x1], 1 }
 0x30d   :  { %1281 = vsyncpa [#allocation8], 1 }
 0x30e   :  { %1283 = vsyncpa [#allocation8 + $0x1], 1 }
 0x30f   :  { %1284 = vsyncmov [#allocation4] }
 0x312   :  { %s1285_s19 = vpop.sfrf %1284 }
 0x313   :  { %p1486_p3 = scmp.ne.s32.totalorder %s1285_s19, 0 }
 0x315   :  { %1289 = shalt.err (%p1486_p3)  }
 0x316   :  { %1291 = vsyncmov [#allocation4 + $0x1] }
 0x319   :  { %s1292_s22 = vpop.sfrf %1291 }
 0x31a   :  { %p1487_p8 = scmp.ne.s32.totalorder %s1292_s22, 0 }
 0x31c   :  { %1296 = shalt.err (%p1487_p8)  }

</bundles_post_ra>
